<compile_context>
chip_gen: v7x
topology: tpu7x:2x2x1
jax: 0.10.0
libtpu: 0.0.40
codegen_flags: <defaults>
</compile_context>

<pallas_src>
import jax
import jax.numpy as jnp
from jax.experimental import pallas as pl
from jax.experimental.pallas import tpu as pltpu


# -----------------------------------------------------------------------------
# helpers
# -----------------------------------------------------------------------------
def _round_up(x, m):
    return ((x + m - 1) // m) * m


def _pad_to(x, shape, value=0.0):
    out = jnp.full(shape, value, x.dtype)
    return out.at[tuple(slice(0, s) for s in x.shape)].set(x)


# -----------------------------------------------------------------------------
# Fused decode-loop kernel (one grid step == one decode timestep)
# -----------------------------------------------------------------------------
def _fused_decode_kernel(flags_ref,                        # SMEM (max_len,) int32
                         temb_ref,                         # (1, B, Ep) f32  teacher emb for step g
                         enc_ref,                          # (B, S, Hp) bf16 encoder outputs
                         encp_ref,                         # (B, S, Hp) bf16 enc @ W_e + b (hoisted)
                         bias_ref,                         # (B, S)     f32  attention mask bias
                         w_h_ref,                          # (Hp, Hp)   bf16
                         v_ref,                            # (1, Hp)    bf16
                         w_c_ref,                          # (Hp, 4Hp)  bf16 LSTM weight (context rows)
                         w_x_ref,                          # (Ep, 4Hp)  bf16 LSTM weight (embed rows)
                         w_hh_ref,                         # (Hp, 4Hp)  bf16 LSTM weight (hidden rows)
                         b_lstm_ref,                       # (1, 4Hp)   f32
                         fc_w_ref,                         # (Hp, Vp)   bf16
                         fc_b_ref,                         # (1, Vp)    f32 (-1e30 in vocab pad)
                         de_emb_ref,                       # (Vp, Ep)   bf16
                         out_ref,                          # (1, B, Vp) f32
                         h_sc, c_sc, x_sc):                # VMEM scratch
    g = pl.program_id(0)
    T = pl.num_programs(0)
    B, Hp = h_sc.shape
    Vp = out_ref.shape[-1]

    @pl.when(g == 0)
    def _():
        h_sc[...] = jnp.zeros_like(h_sc)
        c_sc[...] = jnp.zeros_like(c_sc)

    # Input token embedding: teacher-forced (or first token) overwrites the
    # greedy embedding carried from the previous step.
    @pl.when(jnp.logical_or(g == 0, flags_ref[g] > 0))
    def _():
        x_sc[...] = temb_ref[0]

    hid_bf = h_sc[...].astype(jnp.bfloat16)                # (B, Hp) — cast once, reused twice
    cell = c_sc[...]                                       # (B, Hp) f32
    x_bf = x_sc[...].astype(jnp.bfloat16)                  # (B, Ep)

    # ---- attention (Bahdanau, ReLU energy per reference module) --------------
    hid_proj = jnp.dot(hid_bf, w_h_ref[...],
                       preferred_element_type=jnp.float32)                 # (B, Hp) f32
    energy = jnp.maximum(encp_ref[...] + hid_proj.astype(jnp.bfloat16)[:, None, :],
                         0.0)                                              # (B, S, Hp) bf16
    weighted = energy * v_ref[...][None, :, :]                             # bf16
    scores = jnp.sum(weighted.astype(jnp.float32), axis=-1) + bias_ref[...]  # (B, S) f32

    m = jnp.max(scores, axis=-1, keepdims=True)
    p = jnp.exp(scores - m)
    aw = p / jnp.sum(p, axis=-1, keepdims=True)                            # (B, S) f32 (exact)

    # context via MXU: (B,1,S) @ (B,S,Hp) -> (B,1,Hp), bf16 in / f32 acc.
    context = jnp.einsum('bqs,bsh->bqh', aw[:, None, :].astype(jnp.bfloat16),
                         enc_ref[...],
                         preferred_element_type=jnp.float32)[:, 0, :]      # (B, Hp) f32

    # ---- LSTM cell: three accumulated dots, no concatenate -------------------
    gates = (jnp.dot(context.astype(jnp.bfloat16), w_c_ref[...],
                     preferred_element_type=jnp.float32)
             + jnp.dot(x_bf, w_x_ref[...], preferred_element_type=jnp.float32)
             + jnp.dot(hid_bf, w_hh_ref[...], preferred_element_type=jnp.float32)
             + b_lstm_ref[...])                                            # (B, 4Hp) f32

    i_g = jax.nn.sigmoid(gates[:, 0 * Hp:1 * Hp])
    f_g = jax.nn.sigmoid(gates[:, 1 * Hp:2 * Hp])
    g_g = jnp.tanh(gates[:, 2 * Hp:3 * Hp])
    o_g = jax.nn.sigmoid(gates[:, 3 * Hp:4 * Hp])

    c_new = f_g * cell + i_g * g_g
    h_new = o_g * jnp.tanh(c_new)
    h_sc[...] = h_new
    c_sc[...] = c_new

    # ---- output projection (lane-dense Vp) -----------------------------------
    logits = (jnp.dot(h_new.astype(jnp.bfloat16), fc_w_ref[...],
                      preferred_element_type=jnp.float32) + fc_b_ref[...])  # (B, Vp)
    out_ref[0] = logits

    # ---- greedy next-token embedding: only if the NEXT step exists and is NOT
    # teacher-forced (saves the argmax / one-hot / (B,Vp)x(Vp,Ep) matmul) ------
    @pl.when(jnp.logical_and(g + 1 < T, flags_ref[g + 1] == 0))
    def _():
        col = jax.lax.broadcasted_iota(jnp.int32, (B, Vp), 1)
        mx = jnp.max(logits, axis=-1, keepdims=True)
        idx = jnp.min(jnp.where(logits >= mx, col, Vp), axis=-1, keepdims=True)
        onehot = (col == idx).astype(jnp.bfloat16)                          # (B, Vp)
        x_sc[...] = jnp.dot(onehot, de_emb_ref[...],
                            preferred_element_type=jnp.float32)


def _fused_decode(flags, teacher_emb, enc_bf16, enc_proj_bf16, score_bias, kp):
    T, B, Ep = teacher_emb.shape
    _, S, Hp = enc_bf16.shape
    Vp = kp['fc_w'].shape[1]

    const3 = lambda g, fl: (0, 0, 0)
    const2 = lambda g, fl: (0, 0)

    def resident(shape):
        # Constant across the grid -> single VMEM buffer (no double-buffering).
        imap = const3 if len(shape) == 3 else const2
        return pl.BlockSpec(shape, imap, pipeline_mode=pl.Buffered(1))

    grid_spec = pltpu.PrefetchScalarGridSpec(
        num_scalar_prefetch=1,
        grid=(T,),
        in_specs=[
            pl.BlockSpec((1, B, Ep), lambda g, fl: (g, 0, 0)),   # teacher emb (streamed)
            resident((B, S, Hp)),                                # enc_out
            resident((B, S, Hp)),                                # enc_proj (bf16)
            resident((B, S)),                                    # score bias / mask
            resident((Hp, Hp)),                                  # w_h
            resident((1, Hp)),                                   # v
            resident((Hp, 4 * Hp)),                              # w_lstm (context rows)
            resident((Ep, 4 * Hp)),                              # w_lstm (embed rows)
            resident((Hp, 4 * Hp)),                              # w_lstm (hidden rows)
            resident((1, 4 * Hp)),                               # b_lstm
            resident((Hp, Vp)),                                  # fc_w
            resident((1, Vp)),                                   # fc_b
            resident((Vp, Ep)),                                  # de_embed
        ],
        out_specs=pl.BlockSpec((1, B, Vp), lambda g, fl: (g, 0, 0)),
        scratch_shapes=[pltpu.VMEM((B, Hp), jnp.float32),        # hidden
                        pltpu.VMEM((B, Hp), jnp.float32),        # cell
                        pltpu.VMEM((B, Ep), jnp.float32)],       # current input embedding
    )

    # Leave headroom below physical VMEM (v7x is a 64 MiB part).
    try:
        vmem_cap = int(pltpu.get_tpu_info().vmem_capacity_bytes)
    except Exception:
        vmem_cap = 64 * 1024 * 1024
    vmem_limit = int(min(vmem_cap - 16 * 1024 * 1024, 96 * 1024 * 1024))

    return pl.pallas_call(
        _fused_decode_kernel,
        out_shape=jax.ShapeDtypeStruct((T, B, Vp), jnp.float32),
        grid_spec=grid_spec,
        compiler_params=pltpu.CompilerParams(
            dimension_semantics=("arbitrary",),
            vmem_limit_bytes=vmem_limit),
    )(flags, teacher_emb, enc_bf16, enc_proj_bf16, score_bias,
      kp['w_h'], kp['v'], kp['w_lstm_c'], kp['w_lstm_x'], kp['w_lstm_h'],
      kp['b_lstm'], kp['fc_w'], kp['fc_b'], kp['de_embed'])


# -----------------------------------------------------------------------------
# Parameter preparation: pad to lane-dense (multiples of 128) + bf16 weights.
# -----------------------------------------------------------------------------
def prepare_kernel_params(params):
    attn_w = params['attn_w']                    # (2H, H): rows [0:H]=hidden, [H:2H]=encoder
    H = attn_w.shape[1]
    V, E = params['de_embed'].shape
    Hp, Ep, Vp = _round_up(H, 128), _round_up(E, 128), _round_up(V, 128)

    w_h = _pad_to(attn_w[:H], (Hp, Hp)).astype(jnp.bfloat16)
    w_e = _pad_to(attn_w[H:], (Hp, Hp))                          # f32, host-side enc_proj
    attn_b = _pad_to(params['attn_b'], (1, Hp))
    v = _pad_to(params['v_w'].reshape(1, H), (1, Hp)).astype(jnp.bfloat16)

    # LSTM: relocate each gate block from width H to width Hp (zero pad).
    def gate_pad(w, rows_pad):
        R = w.shape[0]
        out = jnp.zeros((rows_pad, 4 * Hp), jnp.float32)
        for k in range(4):
            out = out.at[:R, k * Hp:k * Hp + H].set(w[:, k * H:(k + 1) * H])
        return out

    w_ih, w_hh = params['w_ih'], params['w_hh']                  # (H+E,4H), (H,4H)
    w_lstm_c = gate_pad(w_ih[:H], Hp).astype(jnp.bfloat16)       # context rows
    w_lstm_x = gate_pad(w_ih[H:], Ep).astype(jnp.bfloat16)       # embedding rows
    w_lstm_h = gate_pad(w_hh, Hp).astype(jnp.bfloat16)           # hidden rows

    b_lstm = jnp.zeros((1, 4 * Hp), jnp.float32)
    for k in range(4):
        b_lstm = b_lstm.at[:, k * Hp:k * Hp + H].set(params['b_lstm'][:, k * H:(k + 1) * H])

    fc_w = _pad_to(params['fc_w'], (Hp, Vp)).astype(jnp.bfloat16)
    fc_b = jnp.full((1, Vp), -1e30, jnp.float32).at[:, :V].set(params['fc_b'])

    # Both input paths (teacher gather + in-kernel greedy gather) use the same
    # bf16-rounded decoder embedding table for consistency.
    de_embed = _pad_to(params['de_embed'].astype(jnp.bfloat16), (Vp, Ep))

    return {'H': H, 'E': E, 'V': V, 'Hp': Hp, 'Ep': Ep, 'Vp': Vp,
            'w_h': w_h, 'w_e': w_e, 'attn_b': attn_b, 'v': v,
            'w_lstm_c': w_lstm_c, 'w_lstm_x': w_lstm_x, 'w_lstm_h': w_lstm_h,
            'b_lstm': b_lstm, 'fc_w': fc_w, 'fc_b': fc_b, 'de_embed': de_embed}


# -----------------------------------------------------------------------------
# Full Bert2SeqAttentionTuned forward.
# -----------------------------------------------------------------------------
def bert2seq_attention_tuned_forward(Problem, attention_mask, Linear_formula,
                                     params, teacher_forcing_ratio=0.6,
                                     tf_key=None):
    B, S = Problem.shape
    max_len = Linear_formula.shape[1]
    T = max_len - 1

    kp = prepare_kernel_params(params)
    V = kp['V']
    Hp, Ep, Vp = kp['Hp'], kp['Ep'], kp['Vp']

    # --- synthetic encoder (see TODO at top) ---------------------------------
    enc_out = jnp.take(params['enc_embed'], Problem, axis=0)
    enc_out = enc_out * attention_mask[..., None].astype(jnp.float32)       # (B,S,H)
    enc_p = _pad_to(enc_out, (B, S, Hp))                                    # (B,S,Hp) f32

    # Hoisted, state-independent attention projection, stored bf16.
    enc_proj = (jnp.dot(enc_p.reshape(B * S, Hp), kp['w_e']).reshape(B, S, Hp)
                + kp['attn_b']).astype(jnp.bfloat16)                        # (B,S,Hp) bf16

    # Mask padded encoder positions out of the softmax.
    score_bias = jnp.where(attention_mask > 0, 0.0, -1e30).astype(jnp.float32)  # (B,S)

    # Teacher-token embeddings for steps 0..T-1 (step 0 == Linear_formula[:,0]),
    # gathered from the same bf16-rounded table the kernel's greedy path uses.
    teacher_emb = jnp.take(kp['de_embed'], Linear_formula[:, :T], axis=0)   # (B,T,Ep) bf16
    teacher_emb = jnp.transpose(teacher_emb, (1, 0, 2)).astype(jnp.float32)  # (T,B,Ep) f32

    # Deterministic teacher-forcing coin flips (one vectorized draw).
    if tf_key is None:
        tf_key = jax.random.PRNGKey(42)
    flags = (jax.random.uniform(tf_key, (max_len,))
             < teacher_forcing_ratio).astype(jnp.int32)                     # (max_len,)

    logits_pad = _fused_decode(flags, teacher_emb,
                               enc_p.astype(jnp.bfloat16), enc_proj,
                               score_bias, kp)                              # (T,B,Vp)

    outputs = jnp.zeros((B, max_len, V), jnp.float32)
    outputs = outputs.at[:, 1:, :].set(jnp.transpose(logits_pad, (1, 0, 2))[:, :, :V])
    return outputs, Linear_formula


# -----------------------------------------------------------------------------
# Deterministic parameter init (shapes follow the module's __init__).
# -----------------------------------------------------------------------------
def init_params(key, *, en_vocab, de_vocab, hidden, embed_dim):
    ks = jax.random.split(key, 10)
    s = 0.05
    enc_embed = s * jax.random.normal(ks[0], (en_vocab, hidden), jnp.float32)
    de_embed = s * jax.random.normal(ks[1], (de_vocab, embed_dim), jnp.float32)
    de_embed = de_embed.at[0].set(0.0)      # padding_idx=0
    return {
        'enc_embed': enc_embed,
        'de_embed': de_embed,
        # AttentionLayersBert: attn = Linear(2H -> H), v = Linear(H -> 1, no bias)
        'attn_w': s * jax.random.normal(ks[2], (2 * hidden, hidden), jnp.float32),
        'attn_b': s * jax.random.normal(ks[3], (1, hidden), jnp.float32),
        'v_w':    s * jax.random.normal(ks[4], (hidden, 1), jnp.float32),
        # LSTM(hidden + embed_dim -> hidden), gate order i, f, g, o
        'w_ih':   s * jax.random.normal(ks[5], (hidden + embed_dim, 4 * hidden), jnp.float32),
        'w_hh':   s * jax.random.normal(ks[6], (hidden, 4 * hidden), jnp.float32),
        'b_lstm': s * jax.random.normal(ks[7], (1, 4 * hidden), jnp.float32),
        # fc = Linear(hidden -> de_vocab)
        'fc_w':   s * jax.random.normal(ks[8], (hidden, de_vocab), jnp.float32),
        'fc_b':   s * jax.random.normal(ks[9], (1, de_vocab), jnp.float32),
    }


if __name__ == "__main__":
    key = jax.random.PRNGKey(0)

    # small shapes consistent with the module's forward
    B = 2          # batch
    S_ENC = 8      # encoder (problem) sequence length
    H = 32         # en_hidden == de_hidden (down-scaled from 768)
    E = 16         # decoder embed_dim (down-scaled from 200)
    V_EN = 40      # encoder vocab (synthetic)
    V_DE = 32      # decoder vocab (len(de_word2idx), synthetic)
    MAX_LEN = 6    # Linear_formula length

    k_param, k_prob, k_form, k_tf = jax.random.split(key, 4)
    params = init_params(k_param, en_vocab=V_EN, de_vocab=V_DE,
                         hidden=H, embed_dim=E)

    Problem = jax.random.randint(k_prob, (B, S_ENC), 1, V_EN, dtype=jnp.int32)
    attention_mask = jnp.ones((B, S_ENC), jnp.int32)
    Linear_formula = jax.random.randint(k_form, (B, MAX_LEN), 1, V_DE, dtype=jnp.int32)

    outputs, lf = bert2seq_attention_tuned_forward(
        Problem, attention_mask, Linear_formula, params,
        teacher_forcing_ratio=0.6, tf_key=k_tf)

    jax.block_until_ready(outputs)
    assert outputs.shape == (B, MAX_LEN, V_DE)
    print("KERNEL_OK")
</pallas_src>

<mosaic_0001>
module attributes {stable_mosaic.version = 11 : i64} {
  func.func @_fused_decode_kernel(%arg0: i32, %arg1: memref<6xi32, #tpu.memory_space<smem>>, %arg2: memref<1x2x128xf32, #tpu.memory_space<vmem>>, %arg3: memref<2x8x128xbf16, #tpu.memory_space<vmem>>, %arg4: memref<2x8x128xbf16, #tpu.memory_space<vmem>>, %arg5: memref<2x8xf32, #tpu.memory_space<vmem>>, %arg6: memref<128x128xbf16, #tpu.memory_space<vmem>>, %arg7: memref<1x128xbf16, #tpu.memory_space<vmem>>, %arg8: memref<128x512xbf16, #tpu.memory_space<vmem>>, %arg9: memref<128x512xbf16, #tpu.memory_space<vmem>>, %arg10: memref<128x512xbf16, #tpu.memory_space<vmem>>, %arg11: memref<1x512xf32, #tpu.memory_space<vmem>>, %arg12: memref<128x128xbf16, #tpu.memory_space<vmem>>, %arg13: memref<1x128xf32, #tpu.memory_space<vmem>>, %arg14: memref<128x128xbf16, #tpu.memory_space<vmem>>, %arg15: memref<1x2x128xf32, #tpu.memory_space<vmem>>, %arg16: memref<2x128xf32, #tpu.memory_space<vmem>>, %arg17: memref<2x128xf32, #tpu.memory_space<vmem>>, %arg18: memref<2x128xf32, #tpu.memory_space<vmem>>) attributes {dimension_semantics = [#tpu.dimension_semantics<arbitrary>], iteration_bounds = array<i64: 5>, scalar_prefetch = 1 : i64, scratch_operands = 3 : i64, tpu.core_type = #tpu.core_type<tc>, window_params = [{transform_indices = @transform_0, window_bounds = array<i64: 1, 2, 128>}, {pipeline_mode = #tpu.pipeline_mode<synchronous>, transform_indices = @transform_1, window_bounds = array<i64: 2, 8, 128>}, {pipeline_mode = #tpu.pipeline_mode<synchronous>, transform_indices = @transform_2, window_bounds = array<i64: 2, 8, 128>}, {pipeline_mode = #tpu.pipeline_mode<synchronous>, transform_indices = @transform_3, window_bounds = array<i64: 2, 8>}, {pipeline_mode = #tpu.pipeline_mode<synchronous>, transform_indices = @transform_4, window_bounds = array<i64: 128, 128>}, {pipeline_mode = #tpu.pipeline_mode<synchronous>, transform_indices = @transform_5, window_bounds = array<i64: 1, 128>}, {pipeline_mode = #tpu.pipeline_mode<synchronous>, transform_indices = @transform_6, window_bounds = array<i64: 128, 512>}, {pipeline_mode = #tpu.pipeline_mode<synchronous>, transform_indices = @transform_7, window_bounds = array<i64: 128, 512>}, {pipeline_mode = #tpu.pipeline_mode<synchronous>, transform_indices = @transform_8, window_bounds = array<i64: 128, 512>}, {pipeline_mode = #tpu.pipeline_mode<synchronous>, transform_indices = @transform_9, window_bounds = array<i64: 1, 512>}, {pipeline_mode = #tpu.pipeline_mode<synchronous>, transform_indices = @transform_10, window_bounds = array<i64: 128, 128>}, {pipeline_mode = #tpu.pipeline_mode<synchronous>, transform_indices = @transform_11, window_bounds = array<i64: 1, 128>}, {pipeline_mode = #tpu.pipeline_mode<synchronous>, transform_indices = @transform_12, window_bounds = array<i64: 128, 128>}, {transform_indices = @transform_13, window_bounds = array<i64: 1, 2, 128>}]} {
    %c0_i32 = arith.constant 0 : i32
    %0 = arith.cmpi eq, %arg0, %c0_i32 : i32
    %1 = arith.extui %0 : i1 to i32
    %c0_i32_0 = arith.constant 0 : i32
    %2 = arith.cmpi ne, %1, %c0_i32_0 : i32
    scf.if %2 {
      %cst_55 = arith.constant 0.000000e+00 : f32
      %103 = vector.broadcast %cst_55 : f32 to vector<2x128xf32>
      %c0_56 = arith.constant 0 : index
      %c0_57 = arith.constant 0 : index
      %104 = vector.load %arg16[%c0_56, %c0_57] : memref<2x128xf32, #tpu.memory_space<vmem>>, vector<2x128xf32>
      tpu.vector_store %arg16[%c0_56, %c0_57], %103 {strides = array<i32>} : memref<2x128xf32, #tpu.memory_space<vmem>>, vector<2x128xf32>,
      %cst_58 = arith.constant 0.000000e+00 : f32
      %105 = vector.broadcast %cst_58 : f32 to vector<2x128xf32>
      %c0_59 = arith.constant 0 : index
      %c0_60 = arith.constant 0 : index
      %106 = vector.load %arg17[%c0_59, %c0_60] : memref<2x128xf32, #tpu.memory_space<vmem>>, vector<2x128xf32>
      tpu.vector_store %arg17[%c0_59, %c0_60], %105 {strides = array<i32>} : memref<2x128xf32, #tpu.memory_space<vmem>>, vector<2x128xf32>,
    } else {
    }
    %c0_i32_1 = arith.constant 0 : i32
    %3 = arith.cmpi eq, %arg0, %c0_i32_1 : i32
    %4 = arith.index_cast %arg0 : i32 to index
    %5 = memref.load %arg1[%4] : memref<6xi32, #tpu.memory_space<smem>>
    %c0_i32_2 = arith.constant 0 : i32
    %6 = arith.cmpi sgt, %5, %c0_i32_2 : i32
    %7 = arith.ori %3, %6 : i1
    %8 = arith.extui %7 : i1 to i32
    %c0_i32_3 = arith.constant 0 : i32
    %9 = arith.cmpi ne, %8, %c0_i32_3 : i32
    scf.if %9 {
      %c0_55 = arith.constant 0 : index
      %c0_56 = arith.constant 0 : index
      %c0_57 = arith.constant 0 : index
      %103 = vector.load %arg2[%c0_55, %c0_56, %c0_57] : memref<1x2x128xf32, #tpu.memory_space<vmem>>, vector<1x2x128xf32>
      %104 = vector.shape_cast %103 : vector<1x2x128xf32> to vector<2x128xf32>
      %c0_58 = arith.constant 0 : index
      %c0_59 = arith.constant 0 : index
      %105 = vector.load %arg18[%c0_58, %c0_59] : memref<2x128xf32, #tpu.memory_space<vmem>>, vector<2x128xf32>
      tpu.vector_store %arg18[%c0_58, %c0_59], %104 {strides = array<i32>} : memref<2x128xf32, #tpu.memory_space<vmem>>, vector<2x128xf32>,
    } else {
    }
    %c0 = arith.constant 0 : index
    %c0_4 = arith.constant 0 : index
    %10 = vector.load %arg16[%c0, %c0_4] : memref<2x128xf32, #tpu.memory_space<vmem>>, vector<2x128xf32>
    %11 = arith.truncf %10 : vector<2x128xf32> to vector<2x128xbf16>
    %c0_5 = arith.constant 0 : index
    %c0_6 = arith.constant 0 : index
    %12 = vector.load %arg17[%c0_5, %c0_6] : memref<2x128xf32, #tpu.memory_space<vmem>>, vector<2x128xf32>
    %c0_7 = arith.constant 0 : index
    %c0_8 = arith.constant 0 : index
    %13 = vector.load %arg18[%c0_7, %c0_8] : memref<2x128xf32, #tpu.memory_space<vmem>>, vector<2x128xf32>
    %14 = arith.truncf %13 : vector<2x128xf32> to vector<2x128xbf16>
    %c0_9 = arith.constant 0 : index
    %c0_10 = arith.constant 0 : index
    %15 = vector.load %arg6[%c0_9, %c0_10] : memref<128x128xbf16, #tpu.memory_space<vmem>>, vector<128x128xbf16>
    %cst = arith.constant dense<0.000000e+00> : vector<2x128xf32>
    %16 = tpu.matmul %11, %15, %cst {dimension_numbers = #tpu.dot_dimension_numbers<[1], [0], [0], [1], [0, 0, 1, 1], [], []>} : vector<2x128xbf16>, vector<128x128xbf16>, vector<2x128xf32> -> vector<2x128xf32>
    %c0_11 = arith.constant 0 : index
    %c0_12 = arith.constant 0 : index
    %c0_13 = arith.constant 0 : index
    %17 = vector.load %arg4[%c0_11, %c0_12, %c0_13] : memref<2x8x128xbf16, #tpu.memory_space<vmem>>, vector<2x8x128xbf16>
    %18 = arith.truncf %16 : vector<2x128xf32> to vector<2x128xbf16>
    %19 = vector.shape_cast %18 : vector<2x128xbf16> to vector<2x1x128xbf16>
    %20 = vector.broadcast %19 : vector<2x1x128xbf16> to vector<2x8x128xbf16>
    %21 = arith.addf %17, %20 : vector<2x8x128xbf16>
    %cst_14 = arith.constant 0.000000e+00 : bf16
    %22 = vector.broadcast %cst_14 : bf16 to vector<2x8x128xbf16>
    %23 = arith.maximumf %21, %22 : vector<2x8x128xbf16>
    %c0_15 = arith.constant 0 : index
    %c0_16 = arith.constant 0 : index
    %24 = vector.load %arg7[%c0_15, %c0_16] : memref<1x128xbf16, #tpu.memory_space<vmem>>, vector<1x128xbf16>
    %25 = vector.shape_cast %24 : vector<1x128xbf16> to vector<1x1x128xbf16>
    %26 = vector.broadcast %25 : vector<1x1x128xbf16> to vector<2x8x128xbf16>
    %27 = arith.mulf %23, %26 : vector<2x8x128xbf16>
    %28 = arith.extf %27 : vector<2x8x128xbf16> to vector<2x8x128xf32>
    %cst_17 = arith.constant dense<0.000000e+00> : vector<2x8xf32>
    %29 = vector.multi_reduction <add>, %28, %cst_17 [2] : vector<2x8x128xf32> to vector<2x8xf32>
    %c0_18 = arith.constant 0 : index
    %c0_19 = arith.constant 0 : index
    %30 = vector.load %arg5[%c0_18, %c0_19] : memref<2x8xf32, #tpu.memory_space<vmem>>, vector<2x8xf32>
    %31 = arith.addf %29, %30 : vector<2x8xf32>
    %cst_20 = arith.constant dense<0xFF800000> : vector<2xf32>
    %32 = vector.multi_reduction <maximumf>, %31, %cst_20 [1] : vector<2x8xf32> to vector<2xf32>
    %33 = vector.shape_cast %32 : vector<2xf32> to vector<2x1xf32>
    %34 = vector.broadcast %33 : vector<2x1xf32> to vector<2x8xf32>
    %35 = arith.subf %31, %34 : vector<2x8xf32>
    %36 = math.exp %35 : vector<2x8xf32>
    %cst_21 = arith.constant dense<0.000000e+00> : vector<2xf32>
    %37 = vector.multi_reduction <add>, %36, %cst_21 [1] : vector<2x8xf32> to vector<2xf32>
    %38 = vector.shape_cast %37 : vector<2xf32> to vector<2x1xf32>
    %39 = vector.broadcast %38 : vector<2x1xf32> to vector<2x8xf32>
    %40 = arith.divf %36, %39 : vector<2x8xf32>
    %41 = vector.shape_cast %40 : vector<2x8xf32> to vector<2x1x8xf32>
    %42 = arith.truncf %41 : vector<2x1x8xf32> to vector<2x1x8xbf16>
    %c0_22 = arith.constant 0 : index
    %c0_23 = arith.constant 0 : index
    %c0_24 = arith.constant 0 : index
    %43 = vector.load %arg3[%c0_22, %c0_23, %c0_24] : memref<2x8x128xbf16, #tpu.memory_space<vmem>>, vector<2x8x128xbf16>
    "tpu.trace_start"() <{level = 10 : i32, message = "bqs,bsh->bqh"}> : () -> ()
    %cst_25 = arith.constant dense<0.000000e+00> : vector<2x1x128xf32>
    %44 = tpu.matmul %42, %43, %cst_25 {dimension_numbers = #tpu.dot_dimension_numbers<[2], [1], [1], [2], [0, 0, 0, 1, 1, 2], [0], [0]>} : vector<2x1x8xbf16>, vector<2x8x128xbf16>, vector<2x1x128xf32> -> vector<2x1x128xf32>
    "tpu.trace_stop"() : () -> ()
    %45 = vector.shape_cast %44 : vector<2x1x128xf32> to vector<2x128xf32>
    %46 = arith.truncf %45 : vector<2x128xf32> to vector<2x128xbf16>
    %c0_26 = arith.constant 0 : index
    %c0_27 = arith.constant 0 : index
    %47 = vector.load %arg8[%c0_26, %c0_27] : memref<128x512xbf16, #tpu.memory_space<vmem>>, vector<128x512xbf16>
    %cst_28 = arith.constant dense<0.000000e+00> : vector<2x512xf32>
    %48 = tpu.matmul %46, %47, %cst_28 {dimension_numbers = #tpu.dot_dimension_numbers<[1], [0], [0], [1], [0, 0, 1, 1], [], []>} : vector<2x128xbf16>, vector<128x512xbf16>, vector<2x512xf32> -> vector<2x512xf32>
    %c0_29 = arith.constant 0 : index
    %c0_30 = arith.constant 0 : index
    %49 = vector.load %arg9[%c0_29, %c0_30] : memref<128x512xbf16, #tpu.memory_space<vmem>>, vector<128x512xbf16>
    %cst_31 = arith.constant dense<0.000000e+00> : vector<2x512xf32>
    %50 = tpu.matmul %14, %49, %cst_31 {dimension_numbers = #tpu.dot_dimension_numbers<[1], [0], [0], [1], [0, 0, 1, 1], [], []>} : vector<2x128xbf16>, vector<128x512xbf16>, vector<2x512xf32> -> vector<2x512xf32>
    %51 = arith.addf %48, %50 : vector<2x512xf32>
    %c0_32 = arith.constant 0 : index
    %c0_33 = arith.constant 0 : index
    %52 = vector.load %arg10[%c0_32, %c0_33] : memref<128x512xbf16, #tpu.memory_space<vmem>>, vector<128x512xbf16>
    %cst_34 = arith.constant dense<0.000000e+00> : vector<2x512xf32>
    %53 = tpu.matmul %11, %52, %cst_34 {dimension_numbers = #tpu.dot_dimension_numbers<[1], [0], [0], [1], [0, 0, 1, 1], [], []>} : vector<2x128xbf16>, vector<128x512xbf16>, vector<2x512xf32> -> vector<2x512xf32>
    %54 = arith.addf %51, %53 : vector<2x512xf32>
    %c0_35 = arith.constant 0 : index
    %c0_36 = arith.constant 0 : index
    %55 = vector.load %arg11[%c0_35, %c0_36] : memref<1x512xf32, #tpu.memory_space<vmem>>, vector<1x512xf32>
    %56 = vector.broadcast %55 : vector<1x512xf32> to vector<2x512xf32>
    %57 = arith.addf %54, %56 : vector<2x512xf32>
    %58 = vector.extract_strided_slice %57 {offsets = [0, 0], sizes = [2, 128], strides = [1, 1]} : vector<2x512xf32> to vector<2x128xf32>
    %59 = arith.negf %58 : vector<2x128xf32>
    %60 = math.exp %59 : vector<2x128xf32>
    %cst_37 = arith.constant 1.000000e+00 : f32
    %61 = vector.broadcast %cst_37 : f32 to vector<2x128xf32>
    %62 = arith.addf %61, %60 : vector<2x128xf32>
    %63 = arith.divf %61, %62 : vector<2x128xf32>
    %64 = vector.extract_strided_slice %57 {offsets = [0, 128], sizes = [2, 128], strides = [1, 1]} : vector<2x512xf32> to vector<2x128xf32>
    %65 = arith.negf %64 : vector<2x128xf32>
    %66 = math.exp %65 : vector<2x128xf32>
    %cst_38 = arith.constant 1.000000e+00 : f32
    %67 = vector.broadcast %cst_38 : f32 to vector<2x128xf32>
    %68 = arith.addf %67, %66 : vector<2x128xf32>
    %69 = arith.divf %67, %68 : vector<2x128xf32>
    %70 = vector.extract_strided_slice %57 {offsets = [0, 256], sizes = [2, 128], strides = [1, 1]} : vector<2x512xf32> to vector<2x128xf32>
    %71 = math.tanh %70 : vector<2x128xf32>
    %72 = vector.extract_strided_slice %57 {offsets = [0, 384], sizes = [2, 128], strides = [1, 1]} : vector<2x512xf32> to vector<2x128xf32>
    %73 = arith.negf %72 : vector<2x128xf32>
    %74 = math.exp %73 : vector<2x128xf32>
    %cst_39 = arith.constant 1.000000e+00 : f32
    %75 = vector.broadcast %cst_39 : f32 to vector<2x128xf32>
    %76 = arith.addf %75, %74 : vector<2x128xf32>
    %77 = arith.divf %75, %76 : vector<2x128xf32>
    %78 = arith.mulf %69, %12 : vector<2x128xf32>
    %79 = arith.mulf %63, %71 : vector<2x128xf32>
    %80 = arith.addf %78, %79 : vector<2x128xf32>
    %81 = math.tanh %80 : vector<2x128xf32>
    %82 = arith.mulf %77, %81 : vector<2x128xf32>
    %c0_40 = arith.constant 0 : index
    %c0_41 = arith.constant 0 : index
    %83 = vector.load %arg16[%c0_40, %c0_41] : memref<2x128xf32, #tpu.memory_space<vmem>>, vector<2x128xf32>
    tpu.vector_store %arg16[%c0_40, %c0_41], %82 {strides = array<i32>} : memref<2x128xf32, #tpu.memory_space<vmem>>, vector<2x128xf32>,
    %c0_42 = arith.constant 0 : index
    %c0_43 = arith.constant 0 : index
    %84 = vector.load %arg17[%c0_42, %c0_43] : memref<2x128xf32, #tpu.memory_space<vmem>>, vector<2x128xf32>
    tpu.vector_store %arg17[%c0_42, %c0_43], %80 {strides = array<i32>} : memref<2x128xf32, #tpu.memory_space<vmem>>, vector<2x128xf32>,
    %85 = arith.truncf %82 : vector<2x128xf32> to vector<2x128xbf16>
    %c0_44 = arith.constant 0 : index
    %c0_45 = arith.constant 0 : index
    %86 = vector.load %arg12[%c0_44, %c0_45] : memref<128x128xbf16, #tpu.memory_space<vmem>>, vector<128x128xbf16>
    %cst_46 = arith.constant dense<0.000000e+00> : vector<2x128xf32>
    %87 = tpu.matmul %85, %86, %cst_46 {dimension_numbers = #tpu.dot_dimension_numbers<[1], [0], [0], [1], [0, 0, 1, 1], [], []>} : vector<2x128xbf16>, vector<128x128xbf16>, vector<2x128xf32> -> vector<2x128xf32>
    %c0_47 = arith.constant 0 : index
    %c0_48 = arith.constant 0 : index
    %88 = vector.load %arg13[%c0_47, %c0_48] : memref<1x128xf32, #tpu.memory_space<vmem>>, vector<1x128xf32>
    %89 = vector.broadcast %88 : vector<1x128xf32> to vector<2x128xf32>
    %90 = arith.addf %87, %89 : vector<2x128xf32>
    %c0_49 = arith.constant 0 : index
    %c0_50 = arith.constant 0 : index
    %c0_51 = arith.constant 0 : index
    %91 = vector.load %arg15[%c0_49, %c0_50, %c0_51] : memref<1x2x128xf32, #tpu.memory_space<vmem>>, vector<1x2x128xf32>
    %92 = vector.shape_cast %91 : vector<1x2x128xf32> to vector<2x128xf32>
    %93 = vector.shape_cast %90 : vector<2x128xf32> to vector<1x2x128xf32>
    tpu.vector_store %arg15[%c0_49, %c0_50, %c0_51], %93 {strides = array<i32>} : memref<1x2x128xf32, #tpu.memory_space<vmem>>, vector<1x2x128xf32>,
    %c1_i32 = arith.constant 1 : i32
    %94 = arith.addi %arg0, %c1_i32 : i32
    %c5_i32 = arith.constant 5 : i32
    %95 = arith.cmpi slt, %94, %c5_i32 : i32
    %c1_i32_52 = arith.constant 1 : i32
    %96 = arith.addi %arg0, %c1_i32_52 : i32
    %97 = arith.index_cast %96 : i32 to index
    %98 = memref.load %arg1[%97] : memref<6xi32, #tpu.memory_space<smem>>
    %c0_i32_53 = arith.constant 0 : i32
    %99 = arith.cmpi eq, %98, %c0_i32_53 : i32
    %100 = arith.andi %95, %99 : i1
    %101 = arith.extui %100 : i1 to i32
    %c0_i32_54 = arith.constant 0 : i32
    %102 = arith.cmpi ne, %101, %c0_i32_54 : i32
    scf.if %102 {
      %103 = tpu.iota {dimensions = array<i32: 1>} : vector<2x128xi32>
      %cst_55 = arith.constant dense<0xFF800000> : vector<2xf32>
      %104 = vector.multi_reduction <maximumf>, %90, %cst_55 [1] : vector<2x128xf32> to vector<2xf32>
      %105 = vector.shape_cast %104 : vector<2xf32> to vector<2x1xf32>
      %106 = vector.broadcast %105 : vector<2x1xf32> to vector<2x128xf32>
      %107 = arith.cmpf oge, %90, %106 : vector<2x128xf32>
      %c128_i32 = arith.constant 128 : i32
      %108 = vector.broadcast %c128_i32 : i32 to vector<2x128xi32>
      %109 = arith.select %107, %103, %108 : vector<2x128xi1>, vector<2x128xi32>
      %cst_56 = arith.constant dense<2147483647> : vector<2xi32>
      %110 = vector.multi_reduction <minsi>, %109, %cst_56 [1] : vector<2x128xi32> to vector<2xi32>
      %111 = vector.shape_cast %110 : vector<2xi32> to vector<2x1xi32>
      %112 = vector.broadcast %111 : vector<2x1xi32> to vector<2x128xi32>
      %113 = arith.cmpi eq, %103, %112 : vector<2x128xi32>
      %114 = arith.extui %113 : vector<2x128xi1> to vector<2x128xi32>
      %115 = arith.sitofp %114 : vector<2x128xi32> to vector<2x128xf32>
      %116 = arith.truncf %115 : vector<2x128xf32> to vector<2x128xbf16>
      %c0_57 = arith.constant 0 : index
      %c0_58 = arith.constant 0 : index
      %117 = vector.load %arg14[%c0_57, %c0_58] : memref<128x128xbf16, #tpu.memory_space<vmem>>, vector<128x128xbf16>
      %cst_59 = arith.constant dense<0.000000e+00> : vector<2x128xf32>
      %118 = tpu.matmul %116, %117, %cst_59 {dimension_numbers = #tpu.dot_dimension_numbers<[1], [0], [0], [1], [0, 0, 1, 1], [], []>} : vector<2x128xbf16>, vector<128x128xbf16>, vector<2x128xf32> -> vector<2x128xf32>
      %c0_60 = arith.constant 0 : index
      %c0_61 = arith.constant 0 : index
      %119 = vector.load %arg18[%c0_60, %c0_61] : memref<2x128xf32, #tpu.memory_space<vmem>>, vector<2x128xf32>
      tpu.vector_store %arg18[%c0_60, %c0_61], %118 {strides = array<i32>} : memref<2x128xf32, #tpu.memory_space<vmem>>, vector<2x128xf32>,
    } else {
    }
    return
  }
  func.func @transform_0(%arg0: i32, %arg1: memref<6xi32, #tpu.memory_space<smem>>) -> (i32, i32, i32) {
    %c0_i32 = arith.constant 0 : i32
    %c0_i32_0 = arith.constant 0 : i32
    %c0_i32_1 = arith.constant 0 : i32
    return %arg0, %c0_i32, %c0_i32_0 : i32, i32, i32
  }
  func.func @transform_1(%arg0: i32, %arg1: memref<6xi32, #tpu.memory_space<smem>>) -> (i32, i32, i32) {
    %c0_i32 = arith.constant 0 : i32
    %c0_i32_0 = arith.constant 0 : i32
    %c0_i32_1 = arith.constant 0 : i32
    %c0_i32_2 = arith.constant 0 : i32
    return %c0_i32, %c0_i32_0, %c0_i32_1 : i32, i32, i32
  }
  func.func @transform_2(%arg0: i32, %arg1: memref<6xi32, #tpu.memory_space<smem>>) -> (i32, i32, i32) {
    %c0_i32 = arith.constant 0 : i32
    %c0_i32_0 = arith.constant 0 : i32
    %c0_i32_1 = arith.constant 0 : i32
    %c0_i32_2 = arith.constant 0 : i32
    return %c0_i32, %c0_i32_0, %c0_i32_1 : i32, i32, i32
  }
  func.func @transform_3(%arg0: i32, %arg1: memref<6xi32, #tpu.memory_space<smem>>) -> (i32, i32) {
    %c0_i32 = arith.constant 0 : i32
    %c0_i32_0 = arith.constant 0 : i32
    %c0_i32_1 = arith.constant 0 : i32
    return %c0_i32, %c0_i32_0 : i32, i32
  }
  func.func @transform_4(%arg0: i32, %arg1: memref<6xi32, #tpu.memory_space<smem>>) -> (i32, i32) {
    %c0_i32 = arith.constant 0 : i32
    %c0_i32_0 = arith.constant 0 : i32
    %c0_i32_1 = arith.constant 0 : i32
    return %c0_i32, %c0_i32_0 : i32, i32
  }
  func.func @transform_5(%arg0: i32, %arg1: memref<6xi32, #tpu.memory_space<smem>>) -> (i32, i32) {
    %c0_i32 = arith.constant 0 : i32
    %c0_i32_0 = arith.constant 0 : i32
    %c0_i32_1 = arith.constant 0 : i32
    return %c0_i32, %c0_i32_0 : i32, i32
  }
  func.func @transform_6(%arg0: i32, %arg1: memref<6xi32, #tpu.memory_space<smem>>) -> (i32, i32) {
    %c0_i32 = arith.constant 0 : i32
    %c0_i32_0 = arith.constant 0 : i32
    %c0_i32_1 = arith.constant 0 : i32
    return %c0_i32, %c0_i32_0 : i32, i32
  }
  func.func @transform_7(%arg0: i32, %arg1: memref<6xi32, #tpu.memory_space<smem>>) -> (i32, i32) {
    %c0_i32 = arith.constant 0 : i32
    %c0_i32_0 = arith.constant 0 : i32
    %c0_i32_1 = arith.constant 0 : i32
    return %c0_i32, %c0_i32_0 : i32, i32
  }
  func.func @transform_8(%arg0: i32, %arg1: memref<6xi32, #tpu.memory_space<smem>>) -> (i32, i32) {
    %c0_i32 = arith.constant 0 : i32
    %c0_i32_0 = arith.constant 0 : i32
    %c0_i32_1 = arith.constant 0 : i32
    return %c0_i32, %c0_i32_0 : i32, i32
  }
  func.func @transform_9(%arg0: i32, %arg1: memref<6xi32, #tpu.memory_space<smem>>) -> (i32, i32) {
    %c0_i32 = arith.constant 0 : i32
    %c0_i32_0 = arith.constant 0 : i32
    %c0_i32_1 = arith.constant 0 : i32
    return %c0_i32, %c0_i32_0 : i32, i32
  }
  func.func @transform_10(%arg0: i32, %arg1: memref<6xi32, #tpu.memory_space<smem>>) -> (i32, i32) {
    %c0_i32 = arith.constant 0 : i32
    %c0_i32_0 = arith.constant 0 : i32
    %c0_i32_1 = arith.constant 0 : i32
    return %c0_i32, %c0_i32_0 : i32, i32
  }
  func.func @transform_11(%arg0: i32, %arg1: memref<6xi32, #tpu.memory_space<smem>>) -> (i32, i32) {
    %c0_i32 = arith.constant 0 : i32
    %c0_i32_0 = arith.constant 0 : i32
    %c0_i32_1 = arith.constant 0 : i32
    return %c0_i32, %c0_i32_0 : i32, i32
  }
  func.func @transform_12(%arg0: i32, %arg1: memref<6xi32, #tpu.memory_space<smem>>) -> (i32, i32) {
    %c0_i32 = arith.constant 0 : i32
    %c0_i32_0 = arith.constant 0 : i32
    %c0_i32_1 = arith.constant 0 : i32
    return %c0_i32, %c0_i32_0 : i32, i32
  }
  func.func @transform_13(%arg0: i32, %arg1: memref<6xi32, #tpu.memory_space<smem>>) -> (i32, i32, i32) {
    %c0_i32 = arith.constant 0 : i32
    %c0_i32_0 = arith.constant 0 : i32
    %c0_i32_1 = arith.constant 0 : i32
    return %arg0, %c0_i32, %c0_i32_0 : i32, i32, i32
  }
}

</mosaic_0001>

<bundles_post_ra>
// kernel: tpu_custom_call.1
= control target key start
LH: loop header
LB: loop body
LE: loop exit
PB: predicated region body
PF: predicated region fallthrough
CT: control target
= control target key end

     0   :  { %s3730_s0 = inlined_call_operand.hbm [shape: s32[6], index: 0, kind: input, shape index: {}]   ;;  %s3731_s1 = inlined_call_operand.hbm [shape: f32[5,2,128], index: 1, kind: input, shape index: {}]   ;;  %s3732_s2 = inlined_call_operand.hbm [shape: bf16[2,8,128], index: 2, kind: input, shape index: {}]   ;;  %s3733_s3 = inlined_call_operand.vmem [shape: bf16[2,8,128], index: 3, kind: input, shape index: {}]   ;;  %s3734_s4 = inlined_call_operand.vmem [shape: f32[2,8], index: 4, kind: input, shape index: {}]   ;;  %s3735_s5 = inlined_call_operand.hbm [shape: bf16[128,128], index: 5, kind: input, shape index: {}]   ;;  %s3736_s6 = inlined_call_operand.vmem [shape: bf16[1,128], index: 6, kind: input, shape index: {}]   ;;  %s3737_s7 = inlined_call_operand.hbm [shape: bf16[128,512], index: 7, kind: input, shape index: {}]   ;;  %s3738_s8 = inlined_call_operand.hbm [shape: bf16[128,512], index: 8, kind: input, shape index: {}]   ;;  %s3739_s9 = inlined_call_operand.hbm [shape: bf16[128,512], index: 9, kind: input, shape index: {}]   ;;  %s3740_s10 = inlined_call_operand.vmem [shape: f32[1,512], index: 10, kind: input, shape index: {}]   ;;  %s3741_s11 = inlined_call_operand.hbm [shape: bf16[128,128], index: 11, kind: input, shape index: {}]   ;;  %s3742_s12 = inlined_call_operand.vmem [shape: f32[1,128], index: 12, kind: input, shape index: {}]   ;;  %s3743_s13 = inlined_call_operand.hbm [shape: bf16[128,128], index: 13, kind: input, shape index: {}]   ;;  %s3744_s14 = inlined_call_operand.hbm [shape: f32[5,2,128], index: 14, kind: output, shape index: {}]  }
   0x1   :  { %3754 = sst [smem:[#allocation29_spill]] %s3732_s2  ;;  %s2841_s15 = scalar_lea.hbm %s3730_s0, 16 }
   0x2   :  { %3755 = sst [smem:[#allocation30_spill]] %s3733_s3  ;;  %p2842_p0 = scmp.ne.s32.totalorder %s3730_s0, %s2841_s15 }
   0x3   :  { %3756 = sst [smem:[#allocation31_spill]] %s3735_s5  ;;  %p2845_p1 = scmp.lt.u32.totalorder %s2841_s15, %s3730_s0 }
   0x4   :  { %3757 = sst [smem:[#allocation32_spill]] %s3736_s6 }
   0x5   :  { %3758 = sst [smem:[#allocation33_spill]] %s3737_s7  ;;  %p2847_p2 = pnand %p2845_p1, %p2842_p0 }
   0x6   :  { %3759 = sst [smem:[#allocation34_spill]] %s3740_s10 }
   0x7   :  { %3760 = sst [smem:[#allocation35_spill]] %s3742_s12 }
   0x8   :  { %3761 = sst [smem:[#allocation36_spill]] %s3744_s14 }
   0x9   :  { %2850 = shalt.err (!%p2847_p2)  }
   0xa   :  { %s3163_s20 = smov [#allocation6]  }
   0xb   :  { %20 = dma.hbm_to_smem %s3730_s0, 16, %s3163_s20, [#allocation5] }
   0xc   :  { %3121 = dma.done.wait [#allocation5], 16 }
   0xd   :  { %3122 = vsyncadd [#allocation5], 4294967280 }
   0xe   :  { %22 = sfence }
   0xf   :  { %23 = vsyncpa [#allocation8], 0 }
  0x10   :  { %25 = vsyncpa [#allocation8 + $0x1], 0 }
  0x11   :  { %26 = vsyncpa [#allocation11], 0 }
  0x12   :  { %27 = vsyncpa [#allocation14], 0 }
  0x13   :  { %28 = vsyncpa [#allocation17], 0 }
  0x14   :  { %29 = vsyncpa [#allocation20], 0 }
  0x15   :  { %30 = vsyncpa [#allocation9], 0 }
  0x16   :  { %32 = vsyncpa [#allocation9 + $0x1], 0  ;;  %s3272_s23 = smov 0   ;;  %s3274_s24 = smov 0  }
  0x17   :  { %s3276_s25 = smov 0   ;;  %s3278_s26 = smov 0  }
  0x18 LB: > { %s3164_s0 = smov [#allocation10]   ;;  %s3293_s28 = sadd.s32 4294967295, %s3161_s26   ;;  %s3161_s26 = sphi %s3278_s26, %s3796_s26   ;;  %s3157_s25 = sphi %s3276_s25, %s3795_s25   ;;  %s3153_s24 = sphi %s3274_s24, %s3794_s24   ;;  %s3149_s23 = sphi %s3272_s23, %s3793_s23  }
  0x19   : > { %s359_s27 = sshll.u32 %s3164_s0, 4  ;;  %p2258_p3 = scmp.ge.s32.totalorder %s3161_s26, 1  ;;  %s3299_s27 = int_to_ptr.vmem [resolvable:$true] %s359_s27 }
  0x1a   : > { %p3749_p4 = scmp.eq.s32.totalorder %s3293_s28, 0  ;;  %p347_p5 = scmp.lt.s32.totalorder %s3161_s26, 6 }
  0x1b   : > { %s3165_s30 = smov [#allocation13]   ;;  %s3166_s17 = smov [#allocation16]  }
  0x1c   : > { %p3301_p7 = pnand %p2258_p3, %p347_p5  ;;  %s394_s15 = sshll.u32 %s3165_s30, 4  ;;  %s3313_s15 = int_to_ptr.vmem [resolvable:$true] %s394_s15 }
  0x1d   : > { %s3315_s18 = sshll.u32 %s3166_s17, 4  ;;  %s3764_s2 = sld [smem:[#allocation29_spill]]  ;;  %s421_s18 = int_to_ptr.vmem [resolvable:$true] %s3315_s18 }
  0x1e   : > { %s3762_s29 = scalar_select %p3301_p7, 1, 0 }
  0x1f   : > { %p2549_p8 = pneg %p3301_p7 }
  0x21   : > { %p3309_p9 = pnand %p2549_p8, %p3749_p4 }
  0x23   : > { %s2851_s21 = scalar_lea.hbm %s3764_s2, 128  ;;  %p3325_p11 = pneg %p3309_p9 }
  0x24   : > { %p2852_p10 = scmp.ne.s32.totalorder %s3764_s2, %s2851_s21  ;;  %p2858_p0 = scmp.lt.u32.totalorder %s2851_s21, %s3764_s2 }
  0x26   : > { %p2854_p12 = pnand %p3325_p11, %p2852_p10 }
  0x28   : > { %p2855_p13 = pneg %p2854_p12 }
  0x2a   : > { %p2860_p1 = pnand %p2858_p0, %p2855_p13 }
  0x2c   : > { %2863 = shalt.err (!%p2860_p1)
}
  0x2d   : > { %s2864_s19 = scalar_lea.vmem %s3299_s27, 128  ;;  %p2872_p8 = scmp.lt.s32.totalorder %s3299_s27, %s3299_s27 }
  0x2e   : > { %p2865_p2 = scmp.ne.s32.totalorder %s3299_s27, %s2864_s19  ;;  %p2873_p6 = scmp.lt.s32.totalorder %s2864_s19, %s2864_s19 }
  0x30   : > { %p2867_p3 = pnand %p2865_p2, %p3325_p11  ;;  %p2874_p10 = por %p2873_p6, %p2872_p8 }
  0x32   : > { %p2868_p5 = pneg %p2867_p3 }
  0x34   : > { %p2875_p12 = pnand %p2874_p10, %p2868_p5 }
  0x36   : > { %2878 = shalt.err (!%p2875_p12)
}
  0x37   : > { %s3747_s20 = smov 64   ;;  %s3751_s14 = smov 4  }
  0x38   : > { %2552 = dma.hbm_to_vmem [thread:$0]  (!%p3309_p9), %s3764_s2, 128, %s3299_s27, [#allocation11], %s3747_s20, %s3747_s20, %s3751_s14  }
  0x39   : > { %s3766_s7 = sld [smem:[#allocation33_spill]] }
  0x3f   : > { %s2879_s19 = scalar_lea.hbm %s3766_s7, 4096 }
  0x40   : > { %p2880_p6 = scmp.ne.s32.totalorder %s3766_s7, %s2879_s19  ;;  %p2886_p1 = scmp.lt.u32.totalorder %s2879_s19, %s3766_s7 }
  0x42   : > { %p2882_p13 = pnand %p2880_p6, %p3325_p11 }
  0x44   : > { %p2883_p0 = pneg %p2882_p13 }
  0x46   : > { %p2888_p2 = pnand %p2886_p1, %p2883_p0 }
  0x48   : > { %2891 = shalt.err (!%p2888_p2)
}
  0x49   : > { %s2892_s27 = scalar_lea.vmem %s3313_s15, 4096  ;;  %p2900_p10 = scmp.lt.s32.totalorder %s3313_s15, %s3313_s15 }
  0x4a   : > { %p2893_p3 = scmp.ne.s32.totalorder %s3313_s15, %s2892_s27  ;;  %p2901_p12 = scmp.lt.s32.totalorder %s2892_s27, %s2892_s27 }
  0x4c   : > { %p2895_p5 = pnand %p2893_p3, %p3325_p11  ;;  %p2902_p6 = por %p2901_p12, %p2900_p10 }
  0x4e   : > { %p2896_p8 = pneg %p2895_p5 }
  0x50   : > { %p2903_p13 = pnand %p2902_p6, %p2896_p8 }
  0x52   : > { %2906 = shalt.err (!%p2903_p13)
}
  0x53   : > { %s3169_s10 = smov 256   ;;  %s3170_s3 = smov 16  }
  0x54   : > { %2558 = dma.hbm_to_vmem [thread:$0]  (!%p3309_p9), %s3766_s7, 4096, %s3313_s15, [#allocation14], %s3169_s10, %s3169_s10, %s3170_s3  }
  0x55   : > { %s2907_s0 = scalar_lea.hbm %s3739_s9, 4096 }
  0x56   : > { %p2908_p0 = scmp.ne.s32.totalorder %s3739_s9, %s2907_s0  ;;  %p2914_p3 = scmp.lt.u32.totalorder %s2907_s0, %s3739_s9 }
  0x58   : > { %p2910_p1 = pnand %p2908_p0, %p3325_p11 }
  0x5a   : > { %p2911_p2 = pneg %p2910_p1 }
  0x5c   : > { %p2916_p5 = pnand %p2914_p3, %p2911_p2 }
  0x5e   : > { %2919 = shalt.err (!%p2916_p5)
}
  0x5f   : > { %s2920_s6 = scalar_lea.vmem %s421_s18, 4096  ;;  %p2928_p6 = scmp.lt.s32.totalorder %s421_s18, %s421_s18 }
  0x60   : > { %p2921_p8 = scmp.ne.s32.totalorder %s421_s18, %s2920_s6  ;;  %p2929_p13 = scmp.lt.s32.totalorder %s2920_s6, %s2920_s6 }
  0x62   : > { %p2923_p10 = pnand %p2921_p8, %p3325_p11  ;;  %p2930_p4 = por %p2929_p13, %p2928_p6 }
  0x64   : > { %p2924_p12 = pneg %p2923_p10 }
  0x66   : > { %p2931_p7 = pnand %p2930_p4, %p2924_p12 }
  0x68   : > { %2934 = shalt.err (!%p2931_p7)
}
  0x69   : > { %2564 = dma.hbm_to_vmem [thread:$0]  (!%p3309_p9), %s3739_s9, 4096, %s421_s18, [#allocation17], %s3169_s10, %s3169_s10, %s3170_s3  }
  0x6a   : > { %s3171_s12 = smov [#allocation12]   ;;  %s3172_s22 = smov [#allocation15]  }
  0x6b   : > { %s378_s21 = sshll.u32 %s3171_s12, 4  ;;  %s407_s0 = sshll.u32 %s3172_s22, 4  ;;  %s379_s21 = int_to_ptr.vmem [resolvable:$true] %s378_s21  ;;  %s408_s0 = int_to_ptr.vmem [resolvable:$true] %s407_s0 }
  0x6c   : > { %s3767_s5 = sld [smem:[#allocation31_spill]] }
  0x72   : > { %s2935_s27 = scalar_lea.hbm %s3767_s5, 1024 }
  0x73   : > { %p2936_p4 = scmp.ne.s32.totalorder %s3767_s5, %s2935_s27  ;;  %p2942_p1 = scmp.lt.u32.totalorder %s2935_s27, %s3767_s5 }
  0x75   : > { %p2938_p7 = pnand %p2936_p4, %p3325_p11 }
  0x77   : > { %p2939_p0 = pneg %p2938_p7 }
  0x79   : > { %p2944_p2 = pnand %p2942_p1, %p2939_p0 }
  0x7b   : > { %2947 = shalt.err (!%p2944_p2)
}
  0x7c   : > { %s2948_s18 = scalar_lea.vmem %s379_s21, 1024  ;;  %p2956_p10 = scmp.lt.s32.totalorder %s379_s21, %s379_s21 }
  0x7d   : > { %p2949_p3 = scmp.ne.s32.totalorder %s379_s21, %s2948_s18  ;;  %p2957_p12 = scmp.lt.s32.totalorder %s2948_s18, %s2948_s18 }
  0x7f   : > { %p2951_p5 = pnand %p2949_p3, %p3325_p11  ;;  %p2958_p6 = por %p2957_p12, %p2956_p10 }
  0x81   : > { %p2952_p8 = pneg %p2951_p5 }
  0x83   : > { %p2959_p13 = pnand %p2958_p6, %p2952_p8 }
  0x85   : > { %2962 = shalt.err (!%p2959_p13)
}
  0x86   : > { %s3768_s14 = smov 4   ;;  %s3769_s20 = smov 64  }
  0x87   : > { %2555 = dma.hbm_to_vmem [thread:$0]  (!%p3309_p9), %s3767_s5, 1024, %s379_s21, [#allocation11], %s3769_s20, %s3769_s20, %s3768_s14  }
  0x88   : > { %s2963_s19 = scalar_lea.hbm %s3738_s8, 4096 }
  0x89   : > { %p2964_p4 = scmp.ne.s32.totalorder %s3738_s8, %s2963_s19  ;;  %p2970_p1 = scmp.lt.u32.totalorder %s2963_s19, %s3738_s8 }
  0x8b   : > { %p2966_p7 = pnand %p2964_p4, %p3325_p11 }
  0x8d   : > { %p2967_p0 = pneg %p2966_p7 }
  0x8f   : > { %p2972_p2 = pnand %p2970_p1, %p2967_p0 }
  0x91   : > { %2975 = shalt.err (!%p2972_p2)
}
  0x92   : > { %s2976_s2 = scalar_lea.vmem %s408_s0, 4096  ;;  %p2984_p10 = scmp.lt.s32.totalorder %s408_s0, %s408_s0 }
  0x93   : > { %p2977_p3 = scmp.ne.s32.totalorder %s408_s0, %s2976_s2  ;;  %p2985_p12 = scmp.lt.s32.totalorder %s2976_s2, %s2976_s2 }
  0x95   : > { %p2979_p5 = pnand %p2977_p3, %p3325_p11  ;;  %p2986_p6 = por %p2985_p12, %p2984_p10 }
  0x97   : > { %p2980_p8 = pneg %p2979_p5 }
  0x99   : > { %p2987_p13 = pnand %p2986_p6, %p2980_p8 }
  0x9b   : > { %2990 = shalt.err (!%p2987_p13)
}
  0x9c   : > { %2561 = dma.hbm_to_vmem [thread:$0]  (!%p3309_p9), %s3738_s8, 4096, %s408_s0, [#allocation14], %s3169_s10, %s3169_s10, %s3170_s3  }
  0x9d   : > { %s3173_s22 = smov [#allocation18]   ;;  %s3174_s19 = smov [#allocation19]  }
  0x9e   : > { %s436_s17 = sshll.u32 %s3173_s22, 4  ;;  %s452_s27 = sshll.u32 %s3174_s19, 4  ;;  %s437_s17 = int_to_ptr.vmem [resolvable:$true] %s436_s17  ;;  %s453_s27 = int_to_ptr.vmem [resolvable:$true] %s452_s27 }
  0x9f   : > { %s2991_s18 = scalar_lea.hbm %s3741_s11, 1024 }
  0xa0   : > { %p2992_p4 = scmp.ne.s32.totalorder %s3741_s11, %s2991_s18  ;;  %p2998_p1 = scmp.lt.u32.totalorder %s2991_s18, %s3741_s11 }
  0xa2   : > { %p2994_p7 = pnand %p2992_p4, %p3325_p11 }
  0xa4   : > { %p2995_p0 = pneg %p2994_p7 }
  0xa6   : > { %p3000_p2 = pnand %p2998_p1, %p2995_p0 }
  0xa8   : > { %3003 = shalt.err (!%p3000_p2)
}
  0xa9   : > { %s3004_s10 = scalar_lea.vmem %s437_s17, 1024  ;;  %p3012_p10 = scmp.lt.s32.totalorder %s437_s17, %s437_s17 }
  0xaa   : > { %p3005_p3 = scmp.ne.s32.totalorder %s437_s17, %s3004_s10  ;;  %p3013_p12 = scmp.lt.s32.totalorder %s3004_s10, %s3004_s10 }
  0xac   : > { %p3007_p5 = pnand %p3005_p3, %p3325_p11  ;;  %p3014_p6 = por %p3013_p12, %p3012_p10 }
  0xae   : > { %p3008_p8 = pneg %p3007_p5 }
  0xb0   : > { %p3015_p13 = pnand %p3014_p6, %p3008_p8 }
  0xb2   : > { %3018 = shalt.err (!%p3015_p13)
}
  0xb3   : > { %2567 = dma.hbm_to_vmem [thread:$0]  (!%p3309_p9), %s3741_s11, 1024, %s437_s17, [#allocation17], %s3769_s20, %s3769_s20, %s3768_s14  }
  0xb4   : > { %s3019_s12 = scalar_lea.hbm %s3743_s13, 1024 }
  0xb5   : > { %p3020_p4 = scmp.ne.s32.totalorder %s3743_s13, %s3019_s12  ;;  %p3026_p1 = scmp.lt.u32.totalorder %s3019_s12, %s3743_s13 }
  0xb7   : > { %p3022_p7 = pnand %p3020_p4, %p3325_p11 }
  0xb9   : > { %p3023_p0 = pneg %p3022_p7 }
  0xbb   : > { %p3028_p2 = pnand %p3026_p1, %p3023_p0 }
  0xbd   : > { %3031 = shalt.err (!%p3028_p2)
}
  0xbe   : > { %s3032_s18 = scalar_lea.vmem %s453_s27, 1024  ;;  %p3040_p10 = scmp.lt.s32.totalorder %s453_s27, %s453_s27 }
  0xbf   : > { %p3033_p3 = scmp.ne.s32.totalorder %s453_s27, %s3032_s18  ;;  %p3041_p12 = scmp.lt.s32.totalorder %s3032_s18, %s3032_s18 }
  0xc1   : > { %p3035_p5 = pnand %p3033_p3, %p3325_p11  ;;  %p3042_p6 = por %p3041_p12, %p3040_p10 }
  0xc3   : > { %p3036_p8 = pneg %p3035_p5 }
  0xc5   : > { %p3043_p13 = pnand %p3042_p6, %p3036_p8 }
  0xc7   : > { %3046 = shalt.err (!%p3043_p13)
}
  0xc8   : > { %2570 = dma.hbm_to_vmem [thread:$0]  (!%p3309_p9), %s3743_s13, 1024, %s453_s27, [#allocation20], %s3769_s20, %s3769_s20, %s3768_s14  }
  0xc9   : > { %s2257_s16 = sadd.s32 4294967294, %s3161_s26   ;;  %s3483_s30 = sadd.s32 1, %s3161_s26  }
  0xca   : > { %s45_s21 = sadd.s32 1, %s3157_s25  ;;  %s42_s10 = ssub.s32 %s3161_s26, %s3483_s30 }
  0xcb   : > { %p52_p11 = scmp.ne.s32.totalorder %s3157_s25, %s3153_s24  ;;  %p43_p4 = scmp.eq.s32.totalorder %s42_s10, 0 }
  0xcc   : > { %p53_p7 = scmp.eq.s32.totalorder %s3161_s26, 0  ;;  %p58_p0 = scmp.ne.s32.totalorder %s3153_s24, %s3149_s23 }
  0xcd   : > { %p334_p1 = scmp.eq.s32.totalorder %s3293_s28, 4  ;;  %p3770_p3 = scmp.eq.s32.totalorder %s3293_s28, 0 }
  0xce   : > { %s3495_s5 = scalar_select %p43_p4, %s3157_s25, %s45_s21  }
  0xcf   : > { %p54_p2 = por %p53_p7, %p52_p11  ;;  %p3499_p5 = por %p3770_p3, %p58_p0 }
  0xd0   : > { %p3503_p9 = por %p334_p1, %p52_p11  ;;  %p340_p8 = scmp.eq.s32.totalorder %s2257_s16, 4 }
  0xd1   : > { %p2586_p10 = scmp.lt.s32.totalorder %s3161_s26, 5  ;;  %s466_s20 = sand.u32 1, %s3157_s25  }
  0xd2   : > { %s3772_s14 = scalar_select %p3503_p9, 1, 0 }
  0xd3   : > { %p3509_p12 = por %p340_p8, %p58_p0  ;;  %s2267_s3 = sshll.u32 %s466_s20, 1 }
  0xd4   : > { %s2268_s0 = sshll.u32 %s3161_s26, 5  ;;  %s470_s6 = scalar_lea.vmem [#allocation7], %s2267_s3 }
  0xd5   : > { %s3773_s27 = scalar_select %p3509_p12, 1, 0 }
  0xd6   : > { %s3517_s19 = scalar_lea.hbm %s3731_s1, %s2268_s0  ;;  %s477_s15 = sshll.u32 %s470_s6, 4  ;;  %s3523_s15 = int_to_ptr.vmem [resolvable:$true] %s477_s15 }
  0xd7   : > { %p3519_p6 = pnand %p2586_p10, %p54_p2  ;;  %s467_s17 = scalar_lea.sflag [#allocation8], %s466_s20 }
  0xd8   : > { %s3047_s2 = scalar_lea.hbm %s3517_s19, 32  ;;  %s3052_s10 = scalar_lea.hbm %s3731_s1, 160 }
  0xd9   : > { %p3048_p13 = scmp.ne.s32.totalorder %s3517_s19, %s3047_s2  ;;  %p3049_p11 = pneg %p3519_p6 }
  0xda   : > { %p3053_p0 = scmp.lt.u32.totalorder %s3517_s19, %s3731_s1  ;;  %p3054_p1 = scmp.lt.u32.totalorder %s3052_s10, %s3047_s2 }
  0xdb   : > { %p3050_p4 = pnand %p3049_p11, %p3048_p13  ;;  %p3056_p3 = scmp.lt.u32.totalorder %s3047_s2, %s3517_s19 }
  0xdc   : > { %p3055_p2 = por %p3054_p1, %p3053_p0 }
  0xdd   : > { %p3051_p7 = pneg %p3050_p4 }
  0xde   : > { %p3057_p8 = por %p3056_p3, %p3055_p2 }
  0xe0   : > { %p3058_p10 = pnand %p3057_p8, %p3051_p7 }
  0xe2   : > { %3061 = shalt.err (!%p3058_p10)
}
  0xe3   : > { %s3062_s20 = scalar_lea.vmem %s3523_s15, 32  ;;  %s3175_s12 = smov [#allocation7]  }
  0xe4   : > { %p3063_p13 = scmp.ne.s32.totalorder %s3523_s15, %s3062_s20  ;;  %s3067_s22 = sshll.u32 %s3175_s12, 4  ;;  %s3068_s22 = int_to_ptr.vmem [resolvable:$false] %s3067_s22 }
  0xe5   : > { %s3069_s6 = scalar_lea.vmem %s3068_s22, 64  ;;  %p3070_p9 = scmp.lt.s32.totalorder %s3523_s15, %s3068_s22 }
  0xe6   : > { %p3065_p4 = pnand %p3063_p13, %p3049_p11  ;;  %p3071_p0 = scmp.lt.s32.totalorder %s3069_s6, %s3062_s20 }
  0xe8   : > { %p3066_p12 = pneg %p3065_p4  ;;  %p3072_p1 = por %p3071_p0, %p3070_p9 }
  0xea   : > { %p3073_p2 = pnand %p3072_p1, %p3066_p12 }
  0xec   : > { %3076 = shalt.err (!%p3073_p2)
}
  0xed   : > { %2574 = dma.hbm_to_vmem [thread:$0]  (!%p3519_p6), %s3517_s19, 32, %s3523_s15, %s467_s17  }
  0xee   : > { %p3775_p7 = scmp.ne.s32.totalorder %s3762_s29, 0 }
  0xef   : > { %s3553_s2 = sand.u32 (!%p3775_p7), 1, %s3153_s24  }
  0xf0   : > { %486 = sbr.rel (%p3775_p7) target bundleno = 2833 (0xb11), region = 72  ;;  %s2270_s16 = sshll.u32 (!%p3775_p7), %s3553_s2, 1 }
  0xf1   : > { %s489_s21 = scalar_lea.sflag (!%p3775_p7), [#allocation8], %s3553_s2  ;;  %s492_s10 = scalar_lea.vmem (!%p3775_p7), [#allocation7], %s2270_s16 }
  0xf7   : > { %3124 = dma.done.wait (%p3499_p5), %s489_s21, 32  }
  0xf8   : > { %3126 = vsyncadd (%p3499_p5), %s489_s21, 4294967264  ;;  %p3776_p9 = scmp.eq.s32.totalorder %s3293_s28, 0 }
  0xfa   : > { %3128 = dma.done.wait (%p3776_p9), [#allocation11], 1152   ;;  %p3777_p12 = pmov %p3776_p9 }
  0xfb   : > { %p3778_p6 = pmov %p3776_p9 }
  0xfc   : > { %3130 = vsyncadd (%p3777_p12), [#allocation11], 4294966144 }
  0xfd   : > { %3132 = dma.done.wait (%p3778_p6), [#allocation14], 8192   ;;  %p3779_p11 = pmov %p3778_p6 }
  0xfe   : > { %p3780_p3 = pmov %p3778_p6 }
  0xff   : > { %3134 = vsyncadd (%p3779_p11), [#allocation14], 4294959104 }
 0x100   : > { %3136 = dma.done.wait (%p3780_p3), [#allocation17], 5120   ;;  %p3781_p8 = pmov %p3780_p3 }
 0x101   : > { %p3782_p5 = pmov %p3780_p3 }
 0x102   : > { %3138 = vsyncadd (%p3781_p8), [#allocation17], 4294962176 }
 0x103   : > { %3140 = dma.done.wait (%p3782_p5), [#allocation20], 1024   ;;  %p3783_p10 = pmov %p3780_p3 }
 0x104   : > { %s3577_s29 = scalar_lea.vmem [#allocation21], %s2270_s16  ;;  %p3784_p13 = scmp.ne.s32.totalorder %s3293_s28, 0 }
 0x105   : > { %3142 = vsyncadd (%p3783_p10), [#allocation20], 4294966272  ;;  %v3176_v0 = vmov (!%p3784_p13), 0.0  }
 0x106   : > { %567 = sbr.rel (%p3784_p13) target bundleno = 269 (0x10d), region = 108  ;;  %568 = vst [vmem:[#allocation2] sm:$0x3] (!%p3784_p13), %v3176_v0  ;;  %569 = vst [vmem:[#allocation3] sm:$0x3] (!%p3784_p13), %v3176_v0 }
 0x10d PF: > { %s570_s7 = sld [smem:[#allocation6 + %s3293_s28]]  ;;  %p3785_p0 = scmp.eq.s32.totalorder %s3293_s28, 0 }
 0x113   : > { %p571_p4 = scmp.gt.s32.totalorder %s570_s7, 0 }
 0x115   : > { %p572_p1 = por %p571_p4, %p3785_p0 }
 0x116   : > { %v576_v1 = vld [vmem:[%s492_s10] sm:$0x3] (%p572_p1) }
 0x117   : > { %575 = sbr.rel (!%p572_p1) target bundleno = 286 (0x11e), region = 112  ;;  %577 = vst [vmem:[#allocation4] sm:$0x3] (%p572_p1), %v576_v1 }
 0x11e PF: > { %v2649_v2 = vld [vmem:[#allocation12] sm:$0xff]   ;;  %v3177_v3 = vmov 0.0   ;;  %v2650_v4 = vld [vmem:[#allocation12 + $0x8] sm:$0xff]   ;;  %vm3178_vm0 = vmmov 0   ;;  %v2651_v5 = vld [vmem:[#allocation12 + $0x10] sm:$0xff]   ;;  %v3179_v13 = vmov 0   ;;  %v694_v14 = vlaneseq }
 0x11f   : > { %2445 = vmatprep.subr.bf16.mxu0 %v3177_v3  ;;  %2471 = vmatprep.subr.bf16.mxu1 %v3177_v3  ;;  %v2652_v6 = vld [vmem:[#allocation12 + $0x18] sm:$0xff]   ;;  %v2653_v7 = vld [vmem:[#allocation12 + $0x20] sm:$0xff]   ;;  %v2654_v8 = vld [vmem:[#allocation12 + $0x28] sm:$0xff]   ;;  %v3180_v21 = vmov 1966171168   ;;  %s3786_s3 = sld [smem:[#allocation32_spill]] }
 0x120   : > { %2446 = vmatpush3.bf16.msra.mxu0 %v2649_v2  ;;  %2461 = vmatprep.mubr.msk.bf16.mxu0 %vm3178_vm0, %v3177_v3  ;;  %v2655_v9 = vld [vmem:[#allocation12 + $0x30] sm:$0xff]   ;;  %v2656_v10 = vld [vmem:[#allocation12 + $0x38] sm:$0xff]   ;;  %v578_v11 = vld [vmem:[#allocation2] sm:$0x3]  ;;  %v3605_v15 = vshrl.u32 %v694_v14, 7  ;;  %v692_v22 = vunpack.c.l.s4 %v3180_v21  ;;  %s3787_s12 = sld [smem:[#allocation30_spill]] }
 0x121   : > { %2447 = vmatprep.subr.bf16.mxu0 %v3177_v3  ;;  %2473 = vmatprep.mubr.msk.bf16.mxu1 %vm3178_vm0, %v3177_v3  ;;  %v3597_v12 = vpack.c.bf16 %v578_v11, %v578_v11  ;;  %v751_v17 = vld [vmem:[%s3734_s4] sm:$0x3]  ;;  %v3635_v60 = vand.u32 127, %v694_v14  ;;  %vm789_vm1 = vcmask 1041409   ;;  %vm792_vm2 = vcmask 58368   ;;  %s3788_s10 = sld [smem:[#allocation34_spill]] }
 0x122   : > { %2647 = vset.pattern.permute.xlu0 %v3179_v13  ;;  %2648 = vset.pattern.permute.xlu1 %v3179_v13  ;;  %v3608_v16 = vsub.s32 0, %v3605_v15  ;;  %v3614_v18 = vsub.s32 1, %v3605_v15  ;;  %v693_v23 = vunpack.c.0.s8 %v692_v22  ;;  %vm867_vm3 = vcmask 1043456   ;;  %s1968_s7 = sadd.s32 1, %s3293_s28  ;;  %s3789_s17 = sld [smem:[#allocation35_spill]] }
 0x123   : > { %v3639_v61 = vsub.s32 %v3635_v60, %v3605_v15  ;;  %vm863_vm4 = vcmask 64512   ;;  %s1970_s19 = sld [smem:[#allocation6 + %s1968_s7]]  ;;  %p1969_p2 = scmp.lt.s32.totalorder %s1968_s7, 5 }
 0x124   : > { %2448 = vmatpush3.bf16.msra.mxu0 %v2650_v4  ;;  %v756_v19 = vrot.slane %v751_v17, %v3608_v16  ;;  %v763_v20 = vrot.slane %v751_v17, %v3614_v18  ;;  %v696_v24 = vsub.s32 %v693_v23, %v3605_v15 }
 0x125   : > { %2449 = vmatprep.subr.bf16.mxu0 %v3177_v3  ;;  %v735_v34 = vld [vmem:[%s3786_s3] sm:$0x1] }
 0x126   : > { %758 = vbcast.lane.b32.xlu1 %v756_v19, 256  ;;  %v737_v39 = vpack.i.b16 %v735_v34, %v735_v34  ;;  %v687_v40 = vld [vmem:[%s3787_s12] sm:$0xf]  ;;  %v688_v43 = vld [vmem:[%s3787_s12 + $0x4] sm:$0xf] }
 0x128   : > { %2450 = vmatpush3.bf16.msra.mxu0 %v2651_v5  ;;  %v742_v45 = vrot.slane %v737_v39, %v3608_v16 }
 0x129   : > { %2451 = vmatprep.subr.bf16.mxu0 %v3177_v3  ;;  %p1971_p7 = scmp.eq.s32.totalorder %s1970_s19, 0 }
 0x12a   : > { %765 = vbcast.lane.b32.xlu1 %v763_v20, 256 }
 0x12b   : > { %p1972_p9 = pnand %p1971_p7, %p1969_p2 }
 0x12c   : > { %2452 = vmatpush3.bf16.msra.mxu0 %v2652_v6  ;;  %vm1976_vm5 = vcmask (!%p1972_p9), 1041408   ;;  %vm3182_vm8 = vmmov (!%p1972_p9), 0  }
 0x12d   : > { %2453 = vmatprep.subr.bf16.mxu0 %v3177_v3 }
 0x130   : > { %2454 = vmatpush3.bf16.msra.mxu0 %v2653_v7 }
 0x131   : > { %2455 = vmatprep.subr.bf16.mxu0 %v3177_v3 }
 0x134   : > { %2456 = vmatpush3.bf16.msra.mxu0 %v2654_v8 }
 0x135   : > { %2457 = vmatprep.subr.bf16.mxu0 %v3177_v3 }
 0x138   : > { %2458 = vmatpush3.bf16.msra.mxu0 %v2655_v9 }
 0x139   : > { %2459 = vmatprep.subr.bf16.mxu0 %v3177_v3 }
 0x13c   : > { %2460 = vmatpush3.bf16.msra.mxu0 %v2656_v10 }
 0x13d   : > { %2465 = vmatprep.subr.bf16.mxu0 %v3177_v3 }
 0x13f   : > { %2462 = vmatmul.mubr.bf16.vlgmr.msra.gmra.mrb[0].mxu0 %v3597_v12 }
 0x140   : > { %2467 = vmatprep.mubr.msk.bf16.mxu0 %vm3178_vm0, %v3177_v3 }
 0x198   : > { %v759_v54 = vpop.permute.xlu1 %758 }
 0x19c   : > { %v766_v57 = vpop.permute.xlu1 %765 }
 0x212   : > { %v681_v25 = vpop.f32.mrb[0].mxu0 }
 0x213   : > { %v689_v26 = vpack.c.bf16 %v681_v25, %v681_v25  ;;  %v2463_v27 = vpop.f32.mrb[1].mxu0 }
 0x214   : > { %v684_v28 = vpop.f32.mrb[2].mxu0 }
 0x215   : > { %v697_v29 = vrot.slane %v689_v26, %v696_v24  ;;  %v2464_v30 = vpop.f32.mrb[3].mxu0 }
 0x217   : > { %v704_v31 = vrot.slane %v697_v29, %v696_v24 }
 0x219   : > { %v706_v32 = vunpack.i.h.s16 %v704_v31  ;;  %v2288_v33 = vpack.i.b16 %v704_v31, %v704_v31 }
 0x21b   : > { %v708_v35 = vpack.i.b16 %v706_v32, %v706_v32  ;;  %v712_v36 = vrot.slane %v2288_v33, %v3608_v16 }
 0x21d   : > { %v716_v37 = vrot.slane %v708_v35, %v3608_v16  ;;  %v718_v38 = vpack.i.b16 %v712_v36, %v712_v36  ;;  %v852_v35 = vld [vmem:[#allocation10 + $0x4] sm:$0xf] }
 0x21e   : > { %v925_v36 = vsel %vm867_vm3, %v852_v35, 0  ;;  %v2720_v35 = vld [vmem:[#allocation13 + $0x48] ss:$16 sps:$4 sm:$0xff]  }
 0x21f   : > { %v725_v41 = vpack.i.b16 %v716_v37, %v716_v37  ;;  %v723_v42 = vrot.slane %v718_v38, %v3608_v16  ;;  %2472 = vmatpush3.bf16.msra.mxu1 %v925_v36  ;;  %v851_v38 = vld [vmem:[#allocation10] sm:$0xf]  ;;  %v2723_v36 = vld [vmem:[#allocation13 + $0x60] ss:$16 sps:$4 sm:$0xff]  }
 0x220   : > { %v869_v39 = vsel %vm867_vm3, %v851_v38, 0  ;;  %v2731_v38 = vld [vmem:[#allocation13 + $0x84] ss:$16 sps:$4 sm:$0xff]  }
 0x221   : > { %v731_v44 = vadd.bf16 %v723_v42, %v687_v40  ;;  %v730_v46 = vrot.slane %v725_v41, %v3608_v16  ;;  %2466 = vmatpush3.bf16.msra.mxu0 %v869_v39  ;;  %v2659_v40 = vld [vmem:[#allocation15 + $0x4] ss:$16 sps:$4 sm:$0xff]   ;;  %v2662_v41 = vld [vmem:[#allocation15 + $0xc] ss:$16 sps:$4 sm:$0xff]   ;;  %v2726_v39 = vld [vmem:[#allocation13 + $0x68] ss:$16 sps:$4 sm:$0xff]  }
 0x222   : > { %1193 = vmatprep.subr.bf16.mxu1 %v2659_v40  ;;  %1234 = vmatprep.subr.bf16.mxu0 %v2662_v41  ;;  %v2729_v40 = vld [vmem:[#allocation13 + $0x80] ss:$16 sps:$4 sm:$0xff]   ;;  %v2734_v41 = vld [vmem:[#allocation13 + $0x8c] ss:$16 sps:$4 sm:$0xff]  }
 0x223   : > { %v733_v47 = vmax.bf16 %v3179_v13, %v731_v44  ;;  %v732_v48 = vadd.bf16 %v730_v46, %v688_v43  ;;  %v2657_v44 = vld [vmem:[#allocation15] ss:$16 sps:$4 sm:$0xff]   ;;  %v2665_v46 = vld [vmem:[#allocation15 + $0x24] ss:$16 sps:$4 sm:$0xff]  }
 0x225   : > { %v743_v49 = vmul.bf16 %v742_v45, %v733_v47  ;;  %v734_v50 = vmax.bf16 %v3179_v13, %v732_v48 }
 0x227   : > { %v745_v51 = vunpack.c.l.bf16 %v743_v49  ;;  %v744_v52 = vmul.bf16 %v742_v45, %v734_v50  ;;  %v2660_v49 = vld [vmem:[#allocation15 + $0x8] ss:$16 sps:$4 sm:$0xff]   ;;  %v2663_v50 = vld [vmem:[#allocation15 + $0x20] ss:$16 sps:$4 sm:$0xff]  }
 0x229   : > { %747 = vadd.xlane.f32.xlu0 %v745_v51  ;;  %v746_v53 = vunpack.c.l.bf16 %v744_v52  ;;  %v2668_v52 = vld [vmem:[#allocation15 + $0x2c] ss:$16 sps:$4 sm:$0xff]  }
 0x22d   : > { %749 = vadd.xlane.f32.xlu0 %v746_v53  ;;  %v2671_v53 = vld [vmem:[#allocation15 + $0x44] ss:$16 sps:$4 sm:$0xff]  }
 0x2b6   : > { %v748_v55 = vpop.xlane.xlu0 %747 }
 0x2b7   : > { %v769_v56 = vadd.f32 %v759_v54, %v748_v55  ;;  %v2666_v54 = vld [vmem:[#allocation15 + $0x28] ss:$16 sps:$4 sm:$0xff]   ;;  %v2669_v55 = vld [vmem:[#allocation15 + $0x40] ss:$16 sps:$4 sm:$0xff]  }
 0x2b9   : > { %774 = vperm.xlu0 %2647, %v769_v56  }
 0x2ba   : > { %v750_v58 = vpop.xlane.xlu0 %749 }
 0x2bb   : > { %v770_v59 = vadd.f32 %v766_v57, %v750_v58  ;;  %v2677_v57 = vld [vmem:[#allocation15 + $0x64] ss:$16 sps:$4 sm:$0xff]   ;;  %v2672_v58 = vld [vmem:[#allocation15 + $0x48] ss:$16 sps:$4 sm:$0xff]  }
 0x2bd   : > { %777 = vperm.xlu1 %2648, %v770_v59  }
 0x338   : > { %v775_v62 = vpop.permute.xlu0 %774 }
 0x339   : > { %v784_v0 = vrot.slane %v775_v62, %v3639_v61  ;;  %v2683_v62 = vld [vmem:[#allocation15 + $0x84] ss:$16 sps:$4 sm:$0xff]  }
 0x33c   : > { %v778_v63 = vpop.permute.xlu1 %777 }
 0x33d   : > { %v788_v1 = vrot.slane %v778_v63, %v3639_v61  ;;  %v2678_v63 = vld [vmem:[#allocation15 + $0x68] ss:$16 sps:$4 sm:$0xff]  }
 0x33f   : > { %v790_v2 = vsel %vm789_vm1, %v788_v1, %v784_v0  ;;  %v2681_v0 = vld [vmem:[#allocation15 + $0x80] ss:$16 sps:$4 sm:$0xff]   ;;  %v2686_v1 = vld [vmem:[#allocation15 + $0x8c] ss:$16 sps:$4 sm:$0xff]  }
 0x340   : > { %v793_v4 = vsel %vm792_vm2, %v790_v2, -inf  ;;  %v2689_v2 = vld [vmem:[#allocation15 + $0xa4] ss:$16 sps:$4 sm:$0xff]  }
 0x341   : > { %794 = vmax.xlane.f32.xlu1 %v793_v4  ;;  %v2684_v4 = vld [vmem:[#allocation15 + $0x88] ss:$16 sps:$4 sm:$0xff]  }
 0x3ce   : > { %v795_v5 = vpop.xlane.xlu1 %794 }
 0x3cf   : > { %v800_v6 = vrot.slane %v795_v5, %v3608_v16  ;;  %v804_v7 = vrot.slane %v795_v5, %v3614_v18  ;;  %v2687_v5 = vld [vmem:[#allocation15 + $0xa0] ss:$16 sps:$4 sm:$0xff]  }
 0x3d1   : > { %v807_v8 = vsub.f32 %v769_v56, %v800_v6  ;;  %v808_v9 = vsub.f32 %v770_v59, %v804_v7  ;;  %v2674_v56 = vld [vmem:[#allocation15 + $0x4c] ss:$16 sps:$4 sm:$0xff]   ;;  %v2675_v59 = vld [vmem:[#allocation15 + $0x60] ss:$16 sps:$4 sm:$0xff]   ;;  %v2695_v7 = vld [vmem:[#allocation15 + $0xc4] ss:$16 sps:$4 sm:$0xff]  }
 0x3d2   : > { %v2692_v6 = vld [vmem:[#allocation15 + $0xac] ss:$16 sps:$4 sm:$0xff]  }
 0x3d3   : > { %v809_v10 = vmul.f32 1.442695, %v807_v8  ;;  %v811_v11 = vmul.f32 1.442695, %v808_v9  ;;  %v2690_v8 = vld [vmem:[#allocation15 + $0xa8] ss:$16 sps:$4 sm:$0xff]  }
 0x3d4   : > { %v2693_v9 = vld [vmem:[#allocation15 + $0xc0] ss:$16 sps:$4 sm:$0xff]  }
 0x3d5   : > { %2809 = vpow2.f32 %v809_v10  ;;  %v2698_v10 = vld [vmem:[#allocation15 + $0xcc] ss:$16 sps:$4 sm:$0xff]  }
 0x3d6   : > { %2811 = vpow2.f32 %v811_v11  ;;  %v2701_v11 = vld [vmem:[#allocation15 + $0xe4] ss:$16 sps:$4 sm:$0xff]  }
 0x3df   : > { %v2810_v14 = vpop.eup %2809 }
 0x3e0   : > { %v2812_v17 = vpop.eup %2811  ;;  %816 = vperm.xlu1 %2648, %v2810_v14  }
 0x3e1   : > { %819 = vperm.xlu0 %2647, %v2812_v17  }
 0x45f   : > { %v817_v19 = vpop.permute.xlu1 %816 }
 0x460   : > { %v820_v20 = vpop.permute.xlu0 %819  ;;  %v824_v21 = vrot.slane %v817_v19, %v3639_v61  ;;  %v581_v19 = vld [vmem:[#allocation4] sm:$0x3] }
 0x461   : > { %v828_v22 = vrot.slane %v820_v20, %v3639_v61  ;;  %v2704_v20 = vld [vmem:[#allocation15 + $0xec] ss:$16 sps:$4 sm:$0xff]  }
 0x463   : > { %v829_v23 = vsel %vm789_vm1, %v828_v22, %v824_v21  ;;  %v2707_v21 = vld [vmem:[#allocation13 + $0x4] ss:$16 sps:$4 sm:$0xff]   ;;  %v582_v22 = vpack.c.bf16 %v581_v19, %v581_v19  ;;  %v2759_v19 = vld [vmem:[#allocation16 + $0x20] ss:$16 sps:$4 sm:$0xff]  }
 0x464   : > { %v831_v24 = vsel %vm792_vm2, %v829_v23, 0.0  ;;  %v2702_v23 = vld [vmem:[#allocation15 + $0xe8] ss:$16 sps:$4 sm:$0xff]  }
 0x465   : > { %832 = vadd.xlane.f32.xlu0 %v831_v24  ;;  %v2705_v24 = vld [vmem:[#allocation13] ss:$16 sps:$4 sm:$0xff]  }
 0x4f2   : > { %v833_v25 = vpop.xlane.xlu0 %832 }
 0x4f3   : > { %v838_v26 = vrot.slane %v833_v25, %v3608_v16  ;;  %v842_v27 = vrot.slane %v833_v25, %v3614_v18  ;;  %v2710_v25 = vld [vmem:[#allocation13 + $0xc] ss:$16 sps:$4 sm:$0xff]  }
 0x4f5   : > { %2813 = vrcp.f32 %v838_v26  ;;  %v2713_v26 = vld [vmem:[#allocation13 + $0x24] ss:$16 sps:$4 sm:$0xff]  }
 0x4f6   : > { %2815 = vrcp.f32 %v842_v27  ;;  %v2708_v27 = vld [vmem:[#allocation13 + $0x8] ss:$16 sps:$4 sm:$0xff]  }
 0x4ff   : > { %v2814_v28 = vpop.eup %2813 }
 0x500   : > { %v2816_v29 = vpop.eup %2815  ;;  %v846_v31 = vmul.f32 %v2814_v28, %v2810_v14  ;;  %v2696_v14 = vld [vmem:[#allocation15 + $0xc8] ss:$16 sps:$4 sm:$0xff]   ;;  %v2711_v28 = vld [vmem:[#allocation13 + $0x20] ss:$16 sps:$4 sm:$0xff]  }
 0x501   : > { %v848_v30 = vmul.f32 %v2816_v29, %v2812_v17  ;;  %v2699_v17 = vld [vmem:[#allocation15 + $0xe0] ss:$16 sps:$4 sm:$0xff]   ;;  %v2716_v29 = vld [vmem:[#allocation13 + $0x2c] ss:$16 sps:$4 sm:$0xff]  }
 0x502   : > { %v849_v34 = vpack.c.bf16 %v846_v31, %v846_v31  ;;  %v2714_v31 = vld [vmem:[#allocation13 + $0x28] ss:$16 sps:$4 sm:$0xff]  }
 0x503   : > { %v850_v32 = vpack.c.bf16 %v848_v30, %v848_v30  ;;  %v2719_v30 = vld [vmem:[#allocation13 + $0x44] ss:$16 sps:$4 sm:$0xff]  }
 0x504   : > { %v854_v37 = vunpack.c.l.b16 %v849_v34  ;;  %v2725_v34 = vld [vmem:[#allocation13 + $0x64] ss:$16 sps:$4 sm:$0xff]  }
 0x505   : > { %v912_v33 = vunpack.c.l.b16 %v850_v32  ;;  %v2717_v32 = vld [vmem:[#allocation13 + $0x40] ss:$16 sps:$4 sm:$0xff]  }
 0x507   : > { %914 = vperm.xlu1 %2648, %v912_v33   ;;  %v2722_v33 = vld [vmem:[#allocation13 + $0x4c] ss:$16 sps:$4 sm:$0xff]  }
 0x50b   : > { %856 = vperm.xlu1 %2648, %v854_v37   ;;  %v2728_v37 = vld [vmem:[#allocation13 + $0x6c] ss:$16 sps:$4 sm:$0xff]  }
 0x586   : > { %v915_v42 = vpop.permute.xlu1 %914 }
 0x587   : > { %v919_v43 = vrot.slane %v915_v42, %v3639_v61  ;;  %v2737_v42 = vld [vmem:[#allocation13 + $0xa4] ss:$16 sps:$4 sm:$0xff]  }
 0x589   : > { %v920_v45 = vpack.c.b16 %v919_v43, %v919_v43  ;;  %v2732_v43 = vld [vmem:[#allocation13 + $0x88] ss:$16 sps:$4 sm:$0xff]  }
 0x58a   : > { %v857_v47 = vpop.permute.xlu1 %856 }
 0x58b   : > { %v861_v48 = vrot.slane %v857_v47, %v3639_v61  ;;  %2474 = vmatmul.mubr.msk.bf16.vlgmr.msra.gmra.mrb[0].mxu1 %vm863_vm4, %v920_v45  ;;  %v2680_v61 = vld [vmem:[#allocation15 + $0x6c] ss:$16 sps:$4 sm:$0xff]   ;;  %v2743_v47 = vld [vmem:[#allocation13 + $0xc4] ss:$16 sps:$4 sm:$0xff]  }
 0x58c   : > { %1194 = vmatpush1.bf16.msra.mxu1 %v2657_v44  ;;  %1225 = vmatprep.mubr.bf16.mxu1 %v3179_v13  ;;  %v2735_v44 = vld [vmem:[#allocation13 + $0xa0] ss:$16 sps:$4 sm:$0xff]   ;;  %v2740_v45 = vld [vmem:[#allocation13 + $0xac] ss:$16 sps:$4 sm:$0xff]  }
 0x58d   : > { %v862_v51 = vpack.c.b16 %v861_v48, %v861_v48  ;;  %1195 = vmatprep.subr.bf16.mxu1 %v2665_v46  ;;  %v2738_v46 = vld [vmem:[#allocation13 + $0xa8] ss:$16 sps:$4 sm:$0xff]   ;;  %v2746_v48 = vld [vmem:[#allocation13 + $0xcc] ss:$16 sps:$4 sm:$0xff]  }
 0x58f   : > { %2468 = vmatmul.mubr.msk.bf16.vlgmr.msra.gmra.mrb[4].mxu0 %vm863_vm4, %v862_v51  ;;  %v2749_v51 = vld [vmem:[#allocation13 + $0xe4] ss:$16 sps:$4 sm:$0xff]  }
 0x590   : > { %1235 = vmatpush1.bf16.msra.mxu0 %v2660_v49  ;;  %1196 = vmatpush1.bf16.msra.mxu1 %v2663_v50  ;;  %v2741_v49 = vld [vmem:[#allocation13 + $0xc0] ss:$16 sps:$4 sm:$0xff]   ;;  %v2744_v50 = vld [vmem:[#allocation13 + $0xc8] ss:$16 sps:$4 sm:$0xff]  }
 0x591   : > { %1236 = vmatprep.subr.bf16.mxu0 %v2668_v52  ;;  %1197 = vmatprep.subr.bf16.mxu1 %v2671_v53  ;;  %v2752_v52 = vld [vmem:[#allocation13 + $0xec] ss:$16 sps:$4 sm:$0xff]   ;;  %v2747_v53 = vld [vmem:[#allocation13 + $0xe0] ss:$16 sps:$4 sm:$0xff]  }
 0x592   : > { %1266 = vmatprep.mubr.bf16.mxu0 %v3179_v13 }
 0x594   : > { %1237 = vmatpush1.bf16.msra.mxu0 %v2666_v54  ;;  %1198 = vmatpush1.bf16.msra.mxu1 %v2669_v55  ;;  %v2750_v54 = vld [vmem:[#allocation13 + $0xe8] ss:$16 sps:$4 sm:$0xff]   ;;  %v2755_v55 = vld [vmem:[#allocation16 + $0x4] ss:$16 sps:$4 sm:$0xff]  }
 0x595   : > { %1238 = vmatprep.subr.bf16.mxu0 %v2674_v56  ;;  %1199 = vmatprep.subr.bf16.mxu1 %v2677_v57  ;;  %v2758_v56 = vld [vmem:[#allocation16 + $0xc] ss:$16 sps:$4 sm:$0xff]  }
 0x598   : > { %1239 = vmatpush1.bf16.msra.mxu0 %v2672_v58  ;;  %1200 = vmatpush1.bf16.msra.mxu1 %v2675_v59 }
 0x599   : > { %1240 = vmatprep.subr.bf16.mxu0 %v2680_v61  ;;  %1201 = vmatprep.subr.bf16.mxu1 %v2683_v62 }
 0x59c   : > { %1241 = vmatpush1.bf16.msra.mxu0 %v2678_v63  ;;  %1202 = vmatpush1.bf16.msra.mxu1 %v2681_v0 }
 0x59d   : > { %1242 = vmatprep.subr.bf16.mxu0 %v2686_v1  ;;  %1203 = vmatprep.subr.bf16.mxu1 %v2689_v2 }
 0x5a0   : > { %1243 = vmatpush1.bf16.msra.mxu0 %v2684_v4  ;;  %1204 = vmatpush1.bf16.msra.mxu1 %v2687_v5 }
 0x5a1   : > { %1244 = vmatprep.subr.bf16.mxu0 %v2692_v6  ;;  %1205 = vmatprep.subr.bf16.mxu1 %v2695_v7 }
 0x5a4   : > { %1245 = vmatpush1.bf16.msra.mxu0 %v2690_v8  ;;  %1206 = vmatpush1.bf16.msra.mxu1 %v2693_v9  ;;  %v2753_v9 = vld [vmem:[#allocation16] ss:$16 sps:$4 sm:$0xff]  }
 0x5a5   : > { %1246 = vmatprep.subr.bf16.mxu0 %v2698_v10  ;;  %1207 = vmatprep.subr.bf16.mxu1 %v2701_v11  ;;  %v2756_v10 = vld [vmem:[#allocation16 + $0x8] ss:$16 sps:$4 sm:$0xff]  }
 0x5a8   : > { %1247 = vmatpush1.bf16.msra.mxu0 %v2696_v14  ;;  %1208 = vmatpush1.bf16.msra.mxu1 %v2699_v17  ;;  %v2761_v14 = vld [vmem:[#allocation16 + $0x24] ss:$16 sps:$4 sm:$0xff]   ;;  %v2764_v17 = vld [vmem:[#allocation16 + $0x2c] ss:$16 sps:$4 sm:$0xff]  }
 0x5a9   : > { %1248 = vmatprep.subr.bf16.mxu0 %v2704_v20  ;;  %1443 = vmatprep.subr.bf16.mxu1 %v2707_v21  ;;  %v2762_v20 = vld [vmem:[#allocation16 + $0x28] ss:$16 sps:$4 sm:$0xff]   ;;  %v2767_v21 = vld [vmem:[#allocation16 + $0x44] ss:$16 sps:$4 sm:$0xff]  }
 0x5ab   : > { %1226 = vmatmul.mubr.bf16.vlgmr.msra.gmra.mrb[4].mxu1 %v582_v22 }
 0x5ac   : > { %1249 = vmatpush1.bf16.msra.mxu0 %v2702_v23  ;;  %1444 = vmatpush1.bf16.msra.mxu1 %v2705_v24  ;;  %v2765_v23 = vld [vmem:[#allocation16 + $0x40] ss:$16 sps:$4 sm:$0xff]   ;;  %v2768_v24 = vld [vmem:[#allocation16 + $0x48] ss:$16 sps:$4 sm:$0xff]  }
 0x5ad   : > { %1484 = vmatprep.subr.bf16.mxu0 %v2710_v25  ;;  %1445 = vmatprep.subr.bf16.mxu1 %v2713_v26  ;;  %v2773_v25 = vld [vmem:[#allocation16 + $0x64] ss:$16 sps:$4 sm:$0xff]   ;;  %v2776_v26 = vld [vmem:[#allocation16 + $0x6c] ss:$16 sps:$4 sm:$0xff]  }
 0x5ae   : > { %1475 = vmatprep.mubr.bf16.mxu1 %v3179_v13 }
 0x5af   : > { %1267 = vmatmul.mubr.bf16.vlgmr.msra.gmra.mrb[8].mxu0 %v582_v22  ;;  %v2770_v22 = vld [vmem:[#allocation16 + $0x4c] ss:$16 sps:$4 sm:$0xff]  }
 0x5b0   : > { %1485 = vmatpush1.bf16.msra.mxu0 %v2708_v27  ;;  %1446 = vmatpush1.bf16.msra.mxu1 %v2711_v28  ;;  %v2771_v27 = vld [vmem:[#allocation16 + $0x60] ss:$16 sps:$4 sm:$0xff]   ;;  %v2774_v28 = vld [vmem:[#allocation16 + $0x68] ss:$16 sps:$4 sm:$0xff]  }
 0x5b1   : > { %1486 = vmatprep.subr.bf16.mxu0 %v2716_v29  ;;  %1447 = vmatprep.subr.bf16.mxu1 %v2719_v30  ;;  %v2779_v29 = vld [vmem:[#allocation16 + $0x84] ss:$16 sps:$4 sm:$0xff]   ;;  %v2782_v30 = vld [vmem:[#allocation16 + $0x8c] ss:$16 sps:$4 sm:$0xff]  }
 0x5b2   : > { %1516 = vmatprep.mubr.bf16.mxu0 %v3179_v13 }
 0x5b4   : > { %1487 = vmatpush1.bf16.msra.mxu0 %v2714_v31  ;;  %1448 = vmatpush1.bf16.msra.mxu1 %v2717_v32  ;;  %v2777_v31 = vld [vmem:[#allocation16 + $0x80] ss:$16 sps:$4 sm:$0xff]   ;;  %v2785_v32 = vld [vmem:[#allocation16 + $0xa4] ss:$16 sps:$4 sm:$0xff]  }
 0x5b5   : > { %1488 = vmatprep.subr.bf16.mxu0 %v2722_v33  ;;  %1449 = vmatprep.subr.bf16.mxu1 %v2725_v34  ;;  %v2788_v33 = vld [vmem:[#allocation16 + $0xac] ss:$16 sps:$4 sm:$0xff]   ;;  %v2783_v34 = vld [vmem:[#allocation16 + $0xa0] ss:$16 sps:$4 sm:$0xff]  }
 0x5b8   : > { %1489 = vmatpush1.bf16.msra.mxu0 %v2720_v35  ;;  %1450 = vmatpush1.bf16.msra.mxu1 %v2723_v36  ;;  %v2786_v35 = vld [vmem:[#allocation16 + $0xa8] ss:$16 sps:$4 sm:$0xff]   ;;  %v2791_v36 = vld [vmem:[#allocation16 + $0xc4] ss:$16 sps:$4 sm:$0xff]  }
 0x5b9   : > { %1490 = vmatprep.subr.bf16.mxu0 %v2728_v37  ;;  %1451 = vmatprep.subr.bf16.mxu1 %v2731_v38  ;;  %v2794_v37 = vld [vmem:[#allocation16 + $0xcc] ss:$16 sps:$4 sm:$0xff]  }
 0x5bc   : > { %1491 = vmatpush1.bf16.msra.mxu0 %v2726_v39  ;;  %1452 = vmatpush1.bf16.msra.mxu1 %v2729_v40  ;;  %v2789_v39 = vld [vmem:[#allocation16 + $0xc0] ss:$16 sps:$4 sm:$0xff]   ;;  %v2792_v40 = vld [vmem:[#allocation16 + $0xc8] ss:$16 sps:$4 sm:$0xff]  }
 0x5bd   : > { %1492 = vmatprep.subr.bf16.mxu0 %v2734_v41  ;;  %1453 = vmatprep.subr.bf16.mxu1 %v2737_v42  ;;  %v2797_v42 = vld [vmem:[#allocation16 + $0xe4] ss:$16 sps:$4 sm:$0xff]  }
 0x5c0   : > { %1493 = vmatpush1.bf16.msra.mxu0 %v2732_v43  ;;  %1454 = vmatpush1.bf16.msra.mxu1 %v2735_v44  ;;  %v2800_v43 = vld [vmem:[#allocation16 + $0xec] ss:$16 sps:$4 sm:$0xff]  }
 0x5c1   : > { %1494 = vmatprep.subr.bf16.mxu0 %v2740_v45  ;;  %1455 = vmatprep.subr.bf16.mxu1 %v2743_v47  ;;  %v2795_v47 = vld [vmem:[#allocation16 + $0xe0] ss:$16 sps:$4 sm:$0xff]  }
 0x5c4   : > { %1495 = vmatpush1.bf16.msra.mxu0 %v2738_v46  ;;  %1456 = vmatpush1.bf16.msra.mxu1 %v2741_v49 }
 0x5c5   : > { %1496 = vmatprep.subr.bf16.mxu0 %v2746_v48  ;;  %1457 = vmatprep.subr.bf16.mxu1 %v2749_v51  ;;  %v2798_v48 = vld [vmem:[#allocation16 + $0xe8] ss:$16 sps:$4 sm:$0xff]  }
 0x5c8   : > { %1497 = vmatpush1.bf16.msra.mxu0 %v2744_v50  ;;  %1458 = vmatpush1.bf16.msra.mxu1 %v2747_v53  ;;  %v2802_v53 = vld [vmem:[#allocation18 + $0x8] sm:$0xff]  }
 0x5c9   : > { %1498 = vmatprep.subr.bf16.mxu0 %v2752_v52  ;;  %1717 = vmatprep.subr.bf16.mxu1 %v2755_v55  ;;  %v2801_v52 = vld [vmem:[#allocation18] sm:$0xff]   ;;  %v2804_v55 = vld [vmem:[#allocation18 + $0x18] sm:$0xff]  }
 0x5cc   : > { %1499 = vmatpush1.bf16.msra.mxu0 %v2750_v54  ;;  %v2803_v54 = vld [vmem:[#allocation18 + $0x10] sm:$0xff]  }
 0x5cd   : > { %1758 = vmatprep.subr.bf16.mxu0 %v2758_v56  ;;  %v2806_v56 = vld [vmem:[#allocation18 + $0x28] sm:$0xff]  }
 0x65e   : > { %v961_v57 = vpop.f32.mrb[0].mxu1 }
 0x65f   : > { %v968_v58 = vpack.c.bf16 %v961_v57, %v961_v57  ;;  %v2475_v59 = vpop.f32.mrb[1].mxu1  ;;  %v2807_v57 = vld [vmem:[#allocation18 + $0x30] sm:$0xff]  }
 0x660   : > { %v964_v61 = vpop.f32.mrb[2].mxu1 }
 0x661   : > { %v1278_v62 = vunpack.c.l.b16 %v968_v58  ;;  %v2476_v63 = vpop.f32.mrb[3].mxu1  ;;  %v2808_v58 = vld [vmem:[#allocation18 + $0x38] sm:$0xff]  }
 0x662   : > { %v905_v0 = vpop.f32.mrb[4].mxu0 }
 0x663   : > { %v967_v1 = vpack.c.bf16 %v905_v0, %v905_v0  ;;  %v2469_v2 = vpop.f32.mrb[5].mxu0  ;;  %v1279_v5 = vrot.slane %v1278_v62, 7 }
 0x664   : > { %v908_v4 = vpop.f32.mrb[6].mxu0 }
 0x665   : > { %v1277_v6 = vunpack.c.l.b16 %v967_v1  ;;  %v2470_v7 = vpop.f32.mrb[7].mxu0 }
 0x667   : > { %v1280_v8 = vsel %vm789_vm1, %v1279_v5, %v1277_v6 }
 0x668   : > { %v1281_v11 = vpack.c.b16 %v1280_v8, %v1280_v8 }
 0x66a   : > { %1476 = vmatmul.mubr.bf16.vlgmr.msra.gmra.mrb[8].mxu1 %v1281_v11  ;;  %1517 = vmatmul.mubr.bf16.vlgmr.msra.gmra.mrb[12].mxu0 %v1281_v11 }
 0x66b   : > { %1718 = vmatpush1.bf16.msra.mxu1 %v2753_v9  ;;  %1759 = vmatpush1.bf16.msra.mxu0 %v2756_v10  ;;  %v1803_v9 = vld [vmem:[%s3788_s10] sm:$0xf] }
 0x66c   : > { %1719 = vmatprep.subr.bf16.mxu1 %v2761_v14  ;;  %1760 = vmatprep.subr.bf16.mxu0 %v2764_v17  ;;  %v1808_v10 = vrot.slane %v1803_v9, %v3608_v16  ;;  %v1812_v14 = vrot.slane %v1803_v9, %v3614_v18  ;;  %v1815_v18 = vsub.s32 2, %v3605_v15 }
 0x66d   : > { %1749 = vmatprep.mubr.bf16.mxu1 %v3179_v13  ;;  %1790 = vmatprep.mubr.bf16.mxu0 %v3179_v13  ;;  %v2780_v13 = vld [vmem:[#allocation16 + $0x88] ss:$16 sps:$4 sm:$0xff]  }
 0x66f   : > { %1720 = vmatpush1.bf16.msra.mxu1 %v2759_v19  ;;  %1761 = vmatpush1.bf16.msra.mxu0 %v2762_v20 }
 0x670   : > { %1721 = vmatprep.subr.bf16.mxu1 %v2767_v21  ;;  %1762 = vmatprep.subr.bf16.mxu0 %v2770_v22 }
 0x673   : > { %1722 = vmatpush1.bf16.msra.mxu1 %v2765_v23  ;;  %1763 = vmatpush1.bf16.msra.mxu0 %v2768_v24  ;;  %v1819_v24 = vsub.s32 3, %v3605_v15 }
 0x674   : > { %1723 = vmatprep.subr.bf16.mxu1 %v2773_v25  ;;  %1764 = vmatprep.subr.bf16.mxu0 %v2776_v26 }
 0x677   : > { %1724 = vmatpush1.bf16.msra.mxu1 %v2771_v27  ;;  %1765 = vmatpush1.bf16.msra.mxu0 %v2774_v28 }
 0x678   : > { %1725 = vmatprep.subr.bf16.mxu1 %v2779_v29  ;;  %1766 = vmatprep.subr.bf16.mxu0 %v2782_v30 }
 0x67b   : > { %1726 = vmatpush1.bf16.msra.mxu1 %v2777_v31  ;;  %1767 = vmatpush1.bf16.msra.mxu0 %v2780_v13  ;;  %v1820_v13 = vrot.slane %v1803_v9, %v1819_v24 }
 0x67c   : > { %1727 = vmatprep.subr.bf16.mxu1 %v2785_v32  ;;  %1768 = vmatprep.subr.bf16.mxu0 %v2788_v33  ;;  %v1816_v33 = vrot.slane %v1803_v9, %v1815_v18 }
 0x67e   : > { %v1227_v38 = vpop.f32.mrb[4].mxu1 }
 0x67f   : > { %1728 = vmatpush1.bf16.msra.mxu1 %v2783_v34  ;;  %1769 = vmatpush1.bf16.msra.mxu0 %v2786_v35  ;;  %v1229_v41 = vpop.f32.mrb[5].mxu1 }
 0x680   : > { %1729 = vmatprep.subr.bf16.mxu1 %v2791_v36  ;;  %1770 = vmatprep.subr.bf16.mxu0 %v2794_v37  ;;  %v1231_v44 = vpop.f32.mrb[6].mxu1 }
 0x681   : > { %v1232_v45 = vpop.f32.mrb[7].mxu1 }
 0x682   : > { %v1268_v46 = vpop.f32.mrb[8].mxu0 }
 0x683   : > { %1730 = vmatpush1.bf16.msra.mxu1 %v2789_v39  ;;  %1771 = vmatpush1.bf16.msra.mxu0 %v2792_v40  ;;  %v1270_v49 = vpop.f32.mrb[9].mxu0 }
 0x684   : > { %1731 = vmatprep.subr.bf16.mxu1 %v2797_v42  ;;  %1772 = vmatprep.subr.bf16.mxu0 %v2800_v43  ;;  %v1272_v50 = vpop.f32.mrb[10].mxu0  ;;  %v580_v42 = vld [vmem:[#allocation3] sm:$0x3] }
 0x685   : > { %v1273_v51 = vpop.f32.mrb[11].mxu0 }
 0x687   : > { %1732 = vmatpush1.bf16.msra.mxu1 %v2795_v47  ;;  %1773 = vmatpush1.bf16.msra.mxu0 %v2798_v48 }
 0x688   : > { %2477 = vmatprep.subr.bf16.mxu1 %v3177_v3 }
 0x68a   : > { %1750 = vmatmul.mubr.bf16.vlgmr.msra.gmra.mrb[12].mxu1 %v3597_v12  ;;  %1791 = vmatmul.mubr.bf16.vlgmr.msra.gmra.mrb[16].mxu0 %v3597_v12  ;;  %v2805_v12 = vld [vmem:[#allocation18 + $0x20] sm:$0xff]  }
 0x68b   : > { %2493 = vmatprep.mubr.msk.bf16.mxu1 %vm3178_vm0, %v3177_v3  ;;  %2478 = vmatpush3.bf16.msra.mxu1 %v2801_v52  ;;  %v2390_v52 = vld [vmem:[%s3789_s17] ss:$0 sm:$0xff] }
 0x68c   : > { %2479 = vmatprep.subr.bf16.mxu1 %v3177_v3 }
 0x68f   : > { %2480 = vmatpush3.bf16.msra.mxu1 %v2802_v53 }
 0x690   : > { %2481 = vmatprep.subr.bf16.mxu1 %v3177_v3 }
 0x693   : > { %2482 = vmatpush3.bf16.msra.mxu1 %v2803_v54 }
 0x694   : > { %2483 = vmatprep.subr.bf16.mxu1 %v3177_v3 }
 0x697   : > { %2484 = vmatpush3.bf16.msra.mxu1 %v2804_v55 }
 0x698   : > { %2485 = vmatprep.subr.bf16.mxu1 %v3177_v3 }
 0x69b   : > { %2486 = vmatpush3.bf16.msra.mxu1 %v2805_v12 }
 0x69c   : > { %2487 = vmatprep.subr.bf16.mxu1 %v3177_v3 }
 0x69f   : > { %2488 = vmatpush3.bf16.msra.mxu1 %v2806_v56 }
 0x6a0   : > { %2489 = vmatprep.subr.bf16.mxu1 %v3177_v3 }
 0x6a3   : > { %2490 = vmatpush3.bf16.msra.mxu1 %v2807_v57 }
 0x6a4   : > { %2491 = vmatprep.subr.bf16.mxu1 %v3177_v3 }
 0x6a7   : > { %2492 = vmatpush3.bf16.msra.mxu1 %v2808_v58 }
 0x73d   : > { %v1477_v59 = vpop.f32.mrb[8].mxu1  ;;  %v1518_v61 = vpop.f32.mrb[12].mxu0 }
 0x73e   : > { %v1478_v62 = vadd.f32 %v1477_v59, %v1227_v38  ;;  %v1519_v63 = vadd.f32 %v1518_v61, %v1268_v46  ;;  %v1479_v0 = vpop.f32.mrb[9].mxu1  ;;  %v1520_v1 = vpop.f32.mrb[13].mxu0 }
 0x73f   : > { %v1480_v2 = vadd.f32 %v1479_v0, %v1229_v41  ;;  %v1521_v4 = vadd.f32 %v1520_v1, %v1270_v49  ;;  %v1481_v5 = vpop.f32.mrb[10].mxu1  ;;  %v1522_v6 = vpop.f32.mrb[14].mxu0  ;;  %v2833_v0 = vld [vmem:[#allocation19] sm:$0xff] (!%p1972_p9)   ;;  %v3181_v1 = vmov (!%p1972_p9), 0.0  }
 0x740   : > { %v1482_v7 = vpop.f32.mrb[11].mxu1  ;;  %v1523_v8 = vpop.f32.mrb[15].mxu0  ;;  %2497 = vmatprep.subr.bf16.mxu0 (!%p1972_p9), %v3181_v1  ;;  %v2836_v5 = vld [vmem:[#allocation19 + $0x18] sm:$0xff] (!%p1972_p9)   ;;  %v2837_v6 = vld [vmem:[#allocation19 + $0x20] sm:$0xff] (!%p1972_p9)   ;;  %2513 = vmatprep.mubr.msk.bf16.mxu0 (!%p1972_p9), %vm3182_vm8, %v3181_v1 }
 0x741   : > { %2498 = vmatpush3.bf16.msra.mxu0 (!%p1972_p9), %v2833_v0  ;;  %v2838_v7 = vld [vmem:[#allocation19 + $0x28] sm:$0xff] (!%p1972_p9)   ;;  %v2839_v8 = vld [vmem:[#allocation19 + $0x30] sm:$0xff] (!%p1972_p9)  }
 0x742   : > { %2499 = vmatprep.subr.bf16.mxu0 (!%p1972_p9), %v3181_v1 }
 0x75d   : > { %v1751_v3 = vpop.f32.mrb[12].mxu1  ;;  %v1792_v11 = vpop.f32.mrb[16].mxu0 }
 0x75e   : > { %v1799_v17 = vadd.f32 %v1751_v3, %v1478_v62  ;;  %v1801_v19 = vadd.f32 %v1792_v11, %v1519_v63  ;;  %v1753_v20 = vpop.f32.mrb[13].mxu1  ;;  %v1794_v21 = vpop.f32.mrb[17].mxu0 }
 0x75f   : > { %v1800_v22 = vadd.f32 %v1753_v20, %v1480_v2  ;;  %v1802_v23 = vadd.f32 %v1794_v21, %v1521_v4  ;;  %v1755_v25 = vpop.f32.mrb[14].mxu1  ;;  %v1796_v26 = vpop.f32.mrb[18].mxu0  ;;  %v2834_v2 = vld [vmem:[#allocation19 + $0x8] sm:$0xff] (!%p1972_p9)   ;;  %v2835_v4 = vld [vmem:[#allocation19 + $0x10] sm:$0xff] (!%p1972_p9)  }
 0x760   : > { %v1825_v27 = vadd.f32 %v1808_v10, %v1799_v17  ;;  %v1756_v28 = vpop.f32.mrb[15].mxu1  ;;  %v1797_v29 = vpop.f32.mrb[19].mxu0  ;;  %v1827_v35 = vadd.f32 %v1816_v33, %v1801_v19  ;;  %2500 = vmatpush3.bf16.msra.mxu0 (!%p1972_p9), %v2834_v2 }
 0x761   : > { %v1826_v30 = vadd.f32 %v1812_v14, %v1800_v22  ;;  %v1828_v32 = vadd.f32 %v1820_v13, %v1802_v23  ;;  %2501 = vmatprep.subr.bf16.mxu0 (!%p1972_p9), %v3181_v1  ;;  %v2840_v14 = vld [vmem:[#allocation19 + $0x38] sm:$0xff] (!%p1972_p9)   ;;  %v3183_v23 = vmov (!%p1972_p9), 1.0|1.0  }
 0x762   : > { %v2387_v31 = vmul.f32 -1.442695, %v1825_v27 }
 0x763   : > { %v2388_v16 = vmul.f32 -1.442695, %v1826_v30  ;;  %v2389_v34 = vmul.f32 -1.442695, %v1828_v32 }
 0x764   : > { %2817 = vpow2.f32 %v2387_v31  ;;  %2502 = vmatpush3.bf16.msra.mxu0 (!%p1972_p9), %v2835_v4 }
 0x765   : > { %2819 = vpow2.f32 %v2388_v16  ;;  %2503 = vmatprep.subr.bf16.mxu0 (!%p1972_p9), %v3181_v1 }
 0x766   : > { %2821 = vpow2.f32 %v2389_v34 }
 0x767   : > { %2823 = vtanh.f32 %v1827_v35 }
 0x768   : > { %2504 = vmatpush3.bf16.msra.mxu0 (!%p1972_p9), %v2836_v5 }
 0x769   : > { %2505 = vmatprep.subr.bf16.mxu0 (!%p1972_p9), %v3181_v1 }
 0x76c   : > { %2506 = vmatpush3.bf16.msra.mxu0 (!%p1972_p9), %v2837_v6 }
 0x76d   : > { %2507 = vmatprep.subr.bf16.mxu0 (!%p1972_p9), %v3181_v1 }
 0x76e   : > { %v2818_v36 = vpop.eup %2817 }
 0x76f   : > { %v2820_v37 = vpop.eup %2819  ;;  %v1832_v38 = vadd.f32 1.0, %v2818_v36 }
 0x770   : > { %v1838_v39 = vadd.f32 1.0, %v2820_v37  ;;  %v2822_v40 = vpop.eup %2821  ;;  %2508 = vmatpush3.bf16.msra.mxu0 (!%p1972_p9), %v2838_v7 }
 0x771   : > { %2825 = vrcp.f32 %v1832_v38  ;;  %v2824_v41 = vpop.eup %2823  ;;  %v1845_v45 = vadd.f32 1.0, %v2822_v40  ;;  %2509 = vmatprep.subr.bf16.mxu0 (!%p1972_p9), %v3181_v1 }
 0x772   : > { %2827 = vrcp.f32 %v1838_v39 }
 0x773   : > { %2829 = vrcp.f32 %v1845_v45 }
 0x774   : > { %2510 = vmatpush3.bf16.msra.mxu0 (!%p1972_p9), %v2839_v8 }
 0x775   : > { %2511 = vmatprep.subr.bf16.mxu0 (!%p1972_p9), %v3181_v1 }
 0x778   : > { %2512 = vmatpush3.bf16.msra.mxu0 (!%p1972_p9), %v2840_v14 }
 0x77b   : > { %v2826_v43 = vpop.eup %2825 }
 0x77c   : > { %v2828_v44 = vpop.eup %2827  ;;  %v1849_v15 = vmul.f32 %v2826_v43, %v2824_v41 }
 0x77d   : > { %v1848_v46 = vmul.f32 %v2828_v44, %v580_v42  ;;  %v2830_v48 = vpop.eup %2829 }
 0x77f   : > { %v1850_v47 = vadd.f32 %v1849_v15, %v1848_v46 }
 0x781   : > { %1854 = vst [vmem:[#allocation3] sm:$0x3] %v1850_v47  ;;  %2831 = vtanh.f32 %v1850_v47 }
 0x78b   : > { %v2832_v49 = vpop.eup %2831 }
 0x78c   : > { %v1852_v50 = vmul.f32 %v2832_v49, %v2830_v48 }
 0x78e   : > { %1853 = vst [vmem:[#allocation2] sm:$0x3] %v1852_v50  ;;  %v1855_v51 = vpack.c.bf16 %v1852_v50, %v1852_v50 }
 0x790   : > { %2494 = vmatmul.mubr.bf16.vlgmr.msra.gmra.mrb[16].mxu1 %v1855_v51 }
 0x860   : > { %1975 = sbr.rel (%p1972_p9) target bundleno = 2807 (0xaf7), region = 116 }
 0x863   : > { %v1961_v53 = vpop.f32.mrb[16].mxu1 }
 0x864   : > { %v1962_v54 = vadd.f32 %v2390_v52, %v1961_v53  ;;  %v2495_v55 = vpop.f32.mrb[17].mxu1 }
 0x865   : > { %v1964_v12 = vpop.f32.mrb[18].mxu1 }
 0x866   : > { %1967 = vst [vmem:[%s3577_s29] sm:$0x3] %v1962_v54  ;;  %v2496_v56 = vpop.f32.mrb[19].mxu1  ;;  %v1977_v57 = vsel (!%p1972_p9), %vm1976_vm5, %v1962_v54, -inf }
 0x867   : > { %1978 = vmax.xlane.f32.xlu0 %v1977_v57 }
 0x8f4   : > { %v1979_v58 = vpop.xlane.xlu0 %1978 }
 0x8f5   : > { %vm1980_vm6 = vcmp.ge.f32.partialorder %v1962_v54, %v1979_v58 }
 0x8f6   : > { %v1981_v59 = vsel %vm1980_vm6, %v3635_v60, 128 }
 0x8f7   : > { %v1982_v61 = vsel %vm1976_vm5, %v1981_v59, 2147483647 }
 0x8f8   : > { %v1984_v62 = vshra.s32 %v1982_v61, 16  ;;  %v1983_v9 = vand.u32 65535, %v1982_v61 }
 0x8fa   : > { %v1986_v63 = vcvt.s32.f32 %v1984_v62  ;;  %v1985_v3 = vcvt.s32.f32 %v1983_v9 }
 0x8fc   : > { %1987 = vmin.xlane.f32.xlu0 %v1986_v63 }
 0x989   : > { %v1988_v10 = vpop.xlane.xlu0 %1987 }
 0x98a   : > { %vm1989_vm7 = vcmp.eq.f32.partialorder %v1986_v63, %v1988_v10  ;;  %v1994_v17 = vcvt.f32.s32 %v1988_v10 }
 0x98b   : > { %v1990_v11 = vsel %vm1989_vm7, %v1985_v3, inf }
 0x98c   : > { %1991 = vmin.xlane.f32.xlu1 %v1990_v11  ;;  %v1995_v20 = vshll.u32 %v1994_v17, 16 }
 0xa19   : > { %v1992_v19 = vpop.xlane.xlu1 %1991 }
 0xa1a   : > { %v1993_v21 = vcvt.f32.s32 %v1992_v19 }
 0xa1c   : > { %v1996_v22 = vadd.s32 %v1995_v20, %v1993_v21 }
 0xa1e   : > { %vm1997_vm9 = vcmp.eq.s32.totalorder %v3635_v60, %v1996_v22 }
 0xa1f   : > { %vm2408_vm10 = vmpackc.low %vm1997_vm9, %vm1997_vm9 }
 0xa20   : > { %2514 = vmatmul.mubr.msk.bf16.vlgmr.msra.gmra.mrb[0].mxu0 %vm2408_vm10, %v3183_v23 }
 0xaf3   : > { %v2099_v24 = vpop.f32.mrb[0].mxu0 }
 0xaf4   : > { %2105 = vst [vmem:[#allocation4] sm:$0x3] %v2099_v24  ;;  %v2515_v25 = vpop.f32.mrb[1].mxu0 }
 0xaf5   : > { %v2102_v26 = vpop.f32.mrb[2].mxu0 }
 0xaf6   : > { %v2516_v27 = vpop.f32.mrb[3].mxu0 }
 0xaf7 PF: > { %s2411_s3 = sshll.u32 %s3293_s28, 5  ;;  %s3790_s22 = sld [smem:[#allocation36_spill]] }
 0xaf8   : > { %s2120_s16 = sshll.u32 %s3577_s29, 4  ;;  %s2107_s21 = scalar_lea.sflag [#allocation9], %s3553_s2  ;;  %s2121_s16 = int_to_ptr.vmem [resolvable:$true] %s2120_s16 }
 0xaf9   : > { %s3077_s10 = scalar_lea.vmem %s2121_s16, 32  ;;  %p3791_p6 = scmp.ne.s32.totalorder %s3772_s14, 0 }
 0xafa   : > { %p3078_p12 = scmp.ne.s32.totalorder %s2121_s16, %s3077_s10  ;;  %s3184_s7 = smov [#allocation21]  }
 0xafb   : > { %s3081_s19 = sshll.u32 %s3184_s7, 4  ;;  %s3082_s19 = int_to_ptr.vmem [resolvable:$false] %s3081_s19 }
 0xafc   : > { %p3079_p11 = pnand %p3078_p12, %p3791_p6  ;;  %s3083_s15 = scalar_lea.vmem %s3082_s19, 64 }
 0xafd   : > { %s3692_s6 = scalar_lea.hbm %s3790_s22, %s2411_s3  ;;  %p3084_p8 = scmp.lt.s32.totalorder %s2121_s16, %s3082_s19 }
 0xafe   : > { %p3080_p3 = pneg %p3079_p11  ;;  %p3085_p5 = scmp.lt.s32.totalorder %s3083_s15, %s3077_s10 }
 0xb00   : > { %p3086_p10 = por %p3085_p5, %p3084_p8 }
 0xb02   : > { %p3087_p13 = pnand %p3086_p10, %p3080_p3 }
 0xb04   : > { %3090 = shalt.err (!%p3087_p13)
}
 0xb05   : > { %s3091_s28 = scalar_lea.hbm %s3692_s6, 32  ;;  %s3095_s18 = scalar_lea.hbm %s3790_s22, 160 }
 0xb06   : > { %p3092_p4 = scmp.ne.s32.totalorder %s3692_s6, %s3091_s28  ;;  %p3096_p2 = scmp.lt.u32.totalorder %s3692_s6, %s3790_s22 }
 0xb07   : > { %p3097_p7 = scmp.lt.u32.totalorder %s3095_s18, %s3091_s28  ;;  %p3099_p12 = scmp.lt.u32.totalorder %s3091_s28, %s3692_s6 }
 0xb08   : > { %p3093_p0 = pnand %p3092_p4, %p3791_p6 }
 0xb09   : > { %p3098_p9 = por %p3097_p7, %p3096_p2 }
 0xb0a   : > { %p3094_p1 = pneg %p3093_p0 }
 0xb0b   : > { %p3100_p11 = por %p3099_p12, %p3098_p9 }
 0xb0d   : > { %p3101_p3 = pnand %p3100_p11, %p3094_p1 }
 0xb0f   : > { %3104 = shalt.err (!%p3101_p3)
}
 0xb10   : > { %2547 = dma.vmem_to_hbm [thread:$0]  (%p3791_p6), %s2121_s16, 32, %s3692_s6, %s2107_s21  }
 0xb11 PF: > { %p2594_p8 = scmp.ge.s32.totalorder %s3161_s26, 2  ;;  %s2132_s0 = sand.u32 1, %s3149_s23  }
 0xb12   : > { %p3792_p5 = scmp.ne.s32.totalorder %s3773_s27, 0  ;;  %s2133_s20 = scalar_lea.sflag [#allocation9], %s2132_s0 }
 0xb14   : > { %p2576_p10 = pnand %p2594_p8, %p3792_p5 }
 0xb16   : > { %3144 = dma.done.wait (!%p2576_p10), %s2133_s20, 32  }
 0xb17   : > { %3146 = vsyncadd (!%p2576_p10), %s2133_s20, 4294967264  ;;  %p35_p13 = scmp.ge.s32.totalorder %s3483_s30, 7   ;;  %s3793_s23 = smov %s3153_s24 }
 0xb18   : > { %s3794_s24 = smov %s3157_s25  ;;  %s3795_s25 = smov %s3495_s5 }
 0xb19   : > { %s3796_s26 = smov %s3483_s30  ;;  %37 = sbr.rel (!%p35_p13) target bundleno = 24 (0x18), region = 157 }
 0xb20   :  { %2138 = vsyncpa [#allocation8], 1 }
 0xb21   :  { %2140 = vsyncpa [#allocation8 + $0x1], 1 }
 0xb22   :  { %2141 = vsyncpa [#allocation11], 1 }
 0xb23   :  { %2142 = vsyncpa [#allocation14], 1 }
 0xb24   :  { %2143 = vsyncpa [#allocation17], 1 }
 0xb25   :  { %2144 = vsyncpa [#allocation20], 1 }
 0xb26   :  { %2145 = vsyncpa [#allocation9], 1 }
 0xb27   :  { %2147 = vsyncpa [#allocation9 + $0x1], 1 }

</bundles_post_ra>
